<compile_context>
chip_gen: v6e
topology: v6e:2x2x1
jax: 0.10.0
libtpu: 0.0.40
codegen_flags: <defaults>
</compile_context>

<pallas_src>
from functools import partial

import jax
import jax.numpy as jnp
from jax import lax
from jax.experimental import pallas as pl
from jax.experimental.pallas import tpu as pltpu

FEAT = 128        # padded feature width (lane dim)
BPAD = 8          # sublane padding for the bias slab
NUM_LAYERS = 5    # Linear layers in the pipe


def qnet_kernel(x_ref, w_ref, b_ref, o_ref):
    """x_ref: [TILE_B, 128]; w_ref: [5, 128, 128]; b_ref: [8, 128] (rows 0..4 used)."""
    h = x_ref[...]
    # Layers 1..4: Linear + Tanh (normalization already folded into layer 1).
    for i in range(NUM_LAYERS - 1):
        h = jnp.tanh(
            jnp.dot(h, w_ref[i],
                    preferred_element_type=jnp.float32,
                    precision=lax.Precision.HIGHEST)
            + b_ref[i:i + 1, :])
    # Layer 5: Linear (no activation).
    o_ref[...] = (
        jnp.dot(h, w_ref[NUM_LAYERS - 1],
                preferred_element_type=jnp.float32,
                precision=lax.Precision.HIGHEST)
        + b_ref[NUM_LAYERS - 1:NUM_LAYERS, :])


def init_qnet_params(key, num_inputs, num_classes):
    """Deterministic synthetic init (PyTorch-Linear-style uniform ranges)."""
    dims = [num_inputs, 10, 20, 20, 30, num_classes]
    params = []
    for i in range(NUM_LAYERS):
        key, kw, kb = jax.random.split(key, 3)
        fan_in, fan_out = dims[i], dims[i + 1]
        bound = 1.0 / (fan_in ** 0.5)
        # Stored transposed: [in, out]  ->  y = x @ W + b  (== PyTorch x @ W.T + b)
        W = jax.random.uniform(kw, (fan_in, fan_out), jnp.float32, -bound, bound)
        b = jax.random.uniform(kb, (fan_out,), jnp.float32, -bound, bound)
        params.append((W, b))

    # Fixed normalization constants from the module __init__ (N is diagonal).
    n_diag = jnp.array([1.0 / (0.6 + 1.2), 1.0 / (0.07 * 2)], jnp.float32)
    B = jnp.array([-1.2, -0.07], jnp.float32)
    return params, n_diag, B


def pack_qnet_params(params, n_diag, B):
    """Fold normalization into layer 1 and pack/pad everything ONCE.

    (x - B) @ diag(n) @ W1 + b1  ==  x @ (n[:,None]*W1) + (b1 - (B*n) @ W1)
    The fold uses only elementwise ops + a 2-term sum, so it is exact-enough
    in f32 (difference vs the unfolded reference is well below 1e-6).
    """
    W1, b1 = params[0]
    W1f = n_diag[:, None] * W1
    b1f = b1 - jnp.sum((B * n_diag)[:, None] * W1, axis=0)
    layers = [(W1f, b1f)] + list(params[1:])

    w_stack = jnp.zeros((NUM_LAYERS, FEAT, FEAT), jnp.float32)
    b_stack = jnp.zeros((BPAD, FEAT), jnp.float32)
    for i, (W, b) in enumerate(layers):
        w_stack = w_stack.at[i, :W.shape[0], :W.shape[1]].set(W)
        b_stack = b_stack.at[i, :b.shape[0]].set(b)
    return w_stack, b_stack


@partial(jax.jit, static_argnames=("num_classes",))
def qnet_forward(x, w_stack, b_stack, num_classes):
    batch, num_inputs = x.shape

    # Tiny batches: one 8-row tile.  Large batches: 256-row tiles to fill the
    # v6e/v7x MXU (fine on v5e too), sharded across cores via "parallel".
    tile_b = 8 if batch <= 8 else 256
    padded_b = -(-batch // tile_b) * tile_b
    x_pad = jnp.zeros((padded_b, FEAT), jnp.float32).at[:batch, :num_inputs].set(x)

    out = pl.pallas_call(
        qnet_kernel,
        out_shape=jax.ShapeDtypeStruct((padded_b, FEAT), jnp.float32),
        grid_spec=pltpu.PrefetchScalarGridSpec(
            num_scalar_prefetch=0,
            grid=(padded_b // tile_b,),
            in_specs=[
                pl.BlockSpec((tile_b, FEAT), lambda i: (i, 0)),
                # Weights / biases: constant index_map -> fetched once, stay
                # VMEM-resident across all batch tiles.
                pl.BlockSpec((NUM_LAYERS, FEAT, FEAT), lambda i: (0, 0, 0)),
                pl.BlockSpec((BPAD, FEAT), lambda i: (0, 0)),
            ],
            out_specs=pl.BlockSpec((tile_b, FEAT), lambda i: (i, 0)),
        ),
        compiler_params=pltpu.CompilerParams(
            dimension_semantics=("parallel",)),
    )(x_pad, w_stack, b_stack)

    return out[:batch, :num_classes]


def qnet_reference(x, params, n_diag, B):
    """Plain-JAX reference mirroring the PyTorch forward (unfolded)."""
    N = jnp.diag(n_diag)
    h = jnp.dot(x - B, N, precision=lax.Precision.HIGHEST)
    for i, (W, b) in enumerate(params):
        h = jnp.dot(h, W, precision=lax.Precision.HIGHEST) + b
        if i < NUM_LAYERS - 1:
            h = jnp.tanh(h)
    return h


if __name__ == "__main__":
    num_inputs = 2     # implied by the 2-d normalization constants N, B
    num_classes = 3
    batch = 4

    key = jax.random.PRNGKey(0)
    kparams, kx = jax.random.split(key)
    params, n_diag, B = init_qnet_params(kparams, num_inputs, num_classes)

    # Pack / pad / fold once (amortized across all forward calls).
    w_stack, b_stack = pack_qnet_params(params, n_diag, B)

    x = jax.random.normal(kx, (batch, num_inputs), jnp.float32)

    y = qnet_forward(x, w_stack, b_stack, num_classes)
    y = jax.block_until_ready(y)

    y_ref = qnet_reference(x, params, n_diag, B)
    assert y.shape == (batch, num_classes)
    assert jnp.allclose(y, y_ref, atol=1e-4, rtol=1e-4), "mismatch vs reference"

    print("KERNEL_OK")
</pallas_src>

<mosaic_0001>
module attributes {stable_mosaic.version = 11 : i64} {
  func.func @qnet_kernel(%arg0: i32, %arg1: memref<8x128xf32, #tpu.memory_space<vmem>>, %arg2: memref<5x128x128xf32, #tpu.memory_space<vmem>>, %arg3: memref<8x128xf32, #tpu.memory_space<vmem>>, %arg4: memref<8x128xf32, #tpu.memory_space<vmem>>) attributes {dimension_semantics = [#tpu.dimension_semantics<parallel>], iteration_bounds = array<i64: 1>, scalar_prefetch = 0 : i64, scratch_operands = 0 : i64, tpu.core_type = #tpu.core_type<tc>, window_params = [{transform_indices = @transform_0, window_bounds = array<i64: 8, 128>}, {pipeline_mode = #tpu.pipeline_mode<synchronous>, transform_indices = @transform_1, window_bounds = array<i64: 5, 128, 128>}, {pipeline_mode = #tpu.pipeline_mode<synchronous>, transform_indices = @transform_2, window_bounds = array<i64: 8, 128>}, {transform_indices = @transform_3, window_bounds = array<i64: 8, 128>}]} {
    %c0 = arith.constant 0 : index
    %c0_0 = arith.constant 0 : index
    %0 = vector.load %arg1[%c0, %c0_0] : memref<8x128xf32, #tpu.memory_space<vmem>>, vector<8x128xf32>
    %c0_1 = arith.constant 0 : index
    %c0_2 = arith.constant 0 : index
    %c0_3 = arith.constant 0 : index
    %1 = vector.load %arg2[%c0_1, %c0_2, %c0_3] : memref<5x128x128xf32, #tpu.memory_space<vmem>>, vector<1x128x128xf32>
    %2 = vector.shape_cast %1 : vector<1x128x128xf32> to vector<128x128xf32>
    %cst = arith.constant dense<0.000000e+00> : vector<8x128xf32>
    %3 = tpu.matmul %0, %2, %cst {dimension_numbers = #tpu.dot_dimension_numbers<[1], [0], [0], [1], [0, 0, 1, 1], [], []>, precision = #tpu.contract_precision<fp32>} : vector<8x128xf32>, vector<128x128xf32>, vector<8x128xf32> -> vector<8x128xf32>
    %c0_4 = arith.constant 0 : index
    %c0_5 = arith.constant 0 : index
    %4 = vector.load %arg3[%c0_4, %c0_5] : memref<8x128xf32, #tpu.memory_space<vmem>>, vector<1x128xf32>
    %5 = vector.broadcast %4 : vector<1x128xf32> to vector<8x128xf32>
    %6 = arith.addf %3, %5 : vector<8x128xf32>
    %7 = math.tanh %6 : vector<8x128xf32>
    %c1 = arith.constant 1 : index
    %c0_6 = arith.constant 0 : index
    %c0_7 = arith.constant 0 : index
    %8 = vector.load %arg2[%c1, %c0_6, %c0_7] : memref<5x128x128xf32, #tpu.memory_space<vmem>>, vector<1x128x128xf32>
    %9 = vector.shape_cast %8 : vector<1x128x128xf32> to vector<128x128xf32>
    %cst_8 = arith.constant dense<0.000000e+00> : vector<8x128xf32>
    %10 = tpu.matmul %7, %9, %cst_8 {dimension_numbers = #tpu.dot_dimension_numbers<[1], [0], [0], [1], [0, 0, 1, 1], [], []>, precision = #tpu.contract_precision<fp32>} : vector<8x128xf32>, vector<128x128xf32>, vector<8x128xf32> -> vector<8x128xf32>
    %c1_9 = arith.constant 1 : index
    %c0_10 = arith.constant 0 : index
    %11 = vector.load %arg3[%c1_9, %c0_10] : memref<8x128xf32, #tpu.memory_space<vmem>>, vector<1x128xf32>
    %12 = vector.broadcast %11 : vector<1x128xf32> to vector<8x128xf32>
    %13 = arith.addf %10, %12 : vector<8x128xf32>
    %14 = math.tanh %13 : vector<8x128xf32>
    %c2 = arith.constant 2 : index
    %c0_11 = arith.constant 0 : index
    %c0_12 = arith.constant 0 : index
    %15 = vector.load %arg2[%c2, %c0_11, %c0_12] : memref<5x128x128xf32, #tpu.memory_space<vmem>>, vector<1x128x128xf32>
    %16 = vector.shape_cast %15 : vector<1x128x128xf32> to vector<128x128xf32>
    %cst_13 = arith.constant dense<0.000000e+00> : vector<8x128xf32>
    %17 = tpu.matmul %14, %16, %cst_13 {dimension_numbers = #tpu.dot_dimension_numbers<[1], [0], [0], [1], [0, 0, 1, 1], [], []>, precision = #tpu.contract_precision<fp32>} : vector<8x128xf32>, vector<128x128xf32>, vector<8x128xf32> -> vector<8x128xf32>
    %c2_14 = arith.constant 2 : index
    %c0_15 = arith.constant 0 : index
    %18 = vector.load %arg3[%c2_14, %c0_15] : memref<8x128xf32, #tpu.memory_space<vmem>>, vector<1x128xf32>
    %19 = vector.broadcast %18 : vector<1x128xf32> to vector<8x128xf32>
    %20 = arith.addf %17, %19 : vector<8x128xf32>
    %21 = math.tanh %20 : vector<8x128xf32>
    %c3 = arith.constant 3 : index
    %c0_16 = arith.constant 0 : index
    %c0_17 = arith.constant 0 : index
    %22 = vector.load %arg2[%c3, %c0_16, %c0_17] : memref<5x128x128xf32, #tpu.memory_space<vmem>>, vector<1x128x128xf32>
    %23 = vector.shape_cast %22 : vector<1x128x128xf32> to vector<128x128xf32>
    %cst_18 = arith.constant dense<0.000000e+00> : vector<8x128xf32>
    %24 = tpu.matmul %21, %23, %cst_18 {dimension_numbers = #tpu.dot_dimension_numbers<[1], [0], [0], [1], [0, 0, 1, 1], [], []>, precision = #tpu.contract_precision<fp32>} : vector<8x128xf32>, vector<128x128xf32>, vector<8x128xf32> -> vector<8x128xf32>
    %c3_19 = arith.constant 3 : index
    %c0_20 = arith.constant 0 : index
    %25 = vector.load %arg3[%c3_19, %c0_20] : memref<8x128xf32, #tpu.memory_space<vmem>>, vector<1x128xf32>
    %26 = vector.broadcast %25 : vector<1x128xf32> to vector<8x128xf32>
    %27 = arith.addf %24, %26 : vector<8x128xf32>
    %28 = math.tanh %27 : vector<8x128xf32>
    %c4 = arith.constant 4 : index
    %c0_21 = arith.constant 0 : index
    %c0_22 = arith.constant 0 : index
    %29 = vector.load %arg2[%c4, %c0_21, %c0_22] : memref<5x128x128xf32, #tpu.memory_space<vmem>>, vector<1x128x128xf32>
    %30 = vector.shape_cast %29 : vector<1x128x128xf32> to vector<128x128xf32>
    %cst_23 = arith.constant dense<0.000000e+00> : vector<8x128xf32>
    %31 = tpu.matmul %28, %30, %cst_23 {dimension_numbers = #tpu.dot_dimension_numbers<[1], [0], [0], [1], [0, 0, 1, 1], [], []>, precision = #tpu.contract_precision<fp32>} : vector<8x128xf32>, vector<128x128xf32>, vector<8x128xf32> -> vector<8x128xf32>
    %c4_24 = arith.constant 4 : index
    %c0_25 = arith.constant 0 : index
    %32 = vector.load %arg3[%c4_24, %c0_25] : memref<8x128xf32, #tpu.memory_space<vmem>>, vector<1x128xf32>
    %33 = vector.broadcast %32 : vector<1x128xf32> to vector<8x128xf32>
    %34 = arith.addf %31, %33 : vector<8x128xf32>
    %c0_26 = arith.constant 0 : index
    %c0_27 = arith.constant 0 : index
    %35 = vector.load %arg4[%c0_26, %c0_27] : memref<8x128xf32, #tpu.memory_space<vmem>>, vector<8x128xf32>
    tpu.vector_store %arg4[%c0_26, %c0_27], %34 {strides = array<i32>} : memref<8x128xf32, #tpu.memory_space<vmem>>, vector<8x128xf32>,
    return
  }
  func.func @transform_0(%arg0: i32) -> (i32, i32) {
    %c0_i32 = arith.constant 0 : i32
    %c0_i32_0 = arith.constant 0 : i32
    return %arg0, %c0_i32 : i32, i32
  }
  func.func @transform_1(%arg0: i32) -> (i32, i32, i32) {
    %c0_i32 = arith.constant 0 : i32
    %c0_i32_0 = arith.constant 0 : i32
    %c0_i32_1 = arith.constant 0 : i32
    %c0_i32_2 = arith.constant 0 : i32
    return %c0_i32, %c0_i32_0, %c0_i32_1 : i32, i32, i32
  }
  func.func @transform_2(%arg0: i32) -> (i32, i32) {
    %c0_i32 = arith.constant 0 : i32
    %c0_i32_0 = arith.constant 0 : i32
    %c0_i32_1 = arith.constant 0 : i32
    return %c0_i32, %c0_i32_0 : i32, i32
  }
  func.func @transform_3(%arg0: i32) -> (i32, i32) {
    %c0_i32 = arith.constant 0 : i32
    %c0_i32_0 = arith.constant 0 : i32
    return %arg0, %c0_i32 : i32, i32
  }
}

</mosaic_0001>

<bundles_post_ra>
// kernel: qnet_forward.1
= control target key start
LH: loop header
LB: loop body
LE: loop exit
PB: predicated region body
PF: predicated region fallthrough
CT: control target
= control target key end

     0   :  { %8 = vsyncpa [#allocation3], 0  ;;  %s4953_s12 = smov [#allocation2]   ;;  %s6801_s0 = inlined_call_operand.vmem [shape: f32[8,128], index: 0, kind: input, shape index: {}]   ;;  %s6802_s1 = inlined_call_operand.hbm [shape: f32[5,128,128], index: 1, kind: input, shape index: {}]   ;;  %s6803_s2 = inlined_call_operand.vmem [shape: f32[8,128], index: 2, kind: input, shape index: {}]   ;;  %s6804_s3 = inlined_call_operand.vmem [shape: f32[8,128], index: 3, kind: output, shape index: {}]  }
   0x1   :  { %s16_s13 = sshll.u32 %s4953_s12, 4  ;;  %s17_s13 = int_to_ptr.vmem [resolvable:$true] %s16_s13 }
   0x2   :  { %s4939_s14 = scalar_lea.vmem %s17_s13, 10240  ;;  %p4944_p1 = scmp.lt.s32.totalorder %s17_s13, %s17_s13 }
   0x3   :  { %p4940_p0 = scmp.ne.s32.totalorder %s17_s13, %s4939_s14  ;;  %p4945_p2 = scmp.lt.s32.totalorder %s4939_s14, %s4939_s14 }
   0x5   :  { %p4946_p3 = por %p4945_p2, %p4944_p1 }
   0x7   :  { %p4947_p4 = pnand %p4946_p3, %p4940_p0 }
   0x9   :  { %4950 = shalt.err (!%p4947_p4)
}
   0xa   :  { %s4954_s15 = smov 128   ;;  %s4955_s16 = smov 8  }
   0xb   :  { %22 = dma.hbm_to_vmem [thread:$0]  %s6802_s1, 10240, %s17_s13, [#allocation3], %s4954_s15, %s4954_s15, %s4955_s16  }
   0xc   :  { %4951 = dma.done.wait [#allocation3], 10240  }
   0xd   :  { %4952 = vsyncadd [#allocation3], 4294957056  ;;  %v4956_v0 = vmov 0.0   ;;  %vm4957_vm0 = vmmov 0   ;;  %v44_v1 = vld [vmem:[#allocation2 + $0x78] sm:$0xff]  ;;  %v43_v2 = vld [vmem:[#allocation2 + $0x70] sm:$0xff] }
   0xe   :  { %3868 = vmatprep.subr.mxu0 %v4956_v0  ;;  %3903 = vmatprep.subr.mxu1 %v4956_v0  ;;  %v42_v3 = vld [vmem:[#allocation2 + $0x68] sm:$0xff]  ;;  %v4987_v4 = vand.u32 4294901760, %v44_v1  ;;  %v4989_v5 = vand.u32 4294901760, %v43_v2  ;;  %v41_v7 = vld [vmem:[#allocation2 + $0x60] sm:$0xff]  ;;  %v40_v8 = vld [vmem:[#allocation2 + $0x58] sm:$0xff] }
   0xf   :  { %3900 = vmatprep.mubr.msk.f32.mxu0 %vm4957_vm0, %v4956_v0  ;;  %3935 = vmatprep.mubr.msk.f32.mxu1 %vm4957_vm0, %v4956_v0  ;;  %v4991_v6 = vand.u32 4294901760, %v42_v3  ;;  %v39_v9 = vld [vmem:[#allocation2 + $0x50] sm:$0xff]  ;;  %v4993_v10 = vand.u32 4294901760, %v41_v7  ;;  %v4995_v11 = vand.u32 4294901760, %v40_v8  ;;  %v38_v13 = vld [vmem:[#allocation2 + $0x48] sm:$0xff]  ;;  %v37_v14 = vld [vmem:[#allocation2 + $0x40] sm:$0xff] }
  0x10   :  { %v4997_v12 = vand.u32 4294901760, %v39_v9  ;;  %3869 = vmatpush3.msra.mxu0 %v4987_v4  ;;  %v5001_v15 = vsub.f32 %v44_v1, %v4987_v4  ;;  %v5004_v16 = vsub.f32 %v43_v2, %v4989_v5  ;;  %v5006_v17 = vand.u32 4294901760, %v38_v13  ;;  %v36_v19 = vld [vmem:[#allocation2 + $0x38] sm:$0xff]  ;;  %v35_v26 = vld [vmem:[#allocation2 + $0x30] sm:$0xff]  ;;  %v34_v36 = vld [vmem:[#allocation2 + $0x28] sm:$0xff] }
  0x11   :  { %v5009_v18 = vsub.f32 %v42_v3, %v4991_v6  ;;  %3870 = vmatprep.subr.mxu0 %v4956_v0  ;;  %v5013_v20 = vsub.f32 %v41_v7, %v4993_v10  ;;  %v5016_v21 = vsub.f32 %v40_v8, %v4995_v11  ;;  %v5022_v25 = vand.u32 4294901760, %v37_v14  ;;  %v33_v41 = vld [vmem:[#allocation2 + $0x20] sm:$0xff]  ;;  %v32_v49 = vld [vmem:[#allocation2 + $0x18] sm:$0xff]  ;;  %v31_v54 = vld [vmem:[#allocation2 + $0x10] sm:$0xff] }
  0x12   :  { %3871 = vmatpush3.msra.mxu0 %v4989_v5  ;;  %v144_v22 = vand.u32 4294901760, %v5001_v15  ;;  %v151_v23 = vand.u32 4294901760, %v5004_v16  ;;  %v5026_v28 = vand.u32 4294901760, %v36_v19  ;;  %v5030_v30 = vsub.f32 %v39_v9, %v4997_v12  ;;  %v28_v50 = vld [vmem:[%s6801_s0] sm:$0xff]  ;;  %v30_v60 = vld [vmem:[#allocation2 + $0x8] sm:$0xff] }
  0x13   :  { %v158_v24 = vand.u32 4294901760, %v5009_v18  ;;  %3872 = vmatprep.subr.mxu0 %v4956_v0  ;;  %v165_v27 = vand.u32 4294901760, %v5013_v20  ;;  %v172_v29 = vand.u32 4294901760, %v5016_v21  ;;  %v5043_v34 = vsub.f32 %v38_v13, %v5006_v17  ;;  %v29_v7 = vld [vmem:[#allocation2] sm:$0xff] }
  0x14   :  { %3873 = vmatpush3.msra.mxu0 %v4991_v6  ;;  %v145_v31 = vsub.f32 %v5001_v15, %v144_v22  ;;  %v152_v32 = vsub.f32 %v5004_v16, %v151_v23  ;;  %v5046_v35 = vand.u32 4294901760, %v35_v26  ;;  %v179_v40 = vand.u32 4294901760, %v5030_v30 }
  0x15   :  { %v159_v33 = vsub.f32 %v5009_v18, %v158_v24  ;;  %3874 = vmatprep.subr.mxu0 %v4956_v0  ;;  %v166_v39 = vsub.f32 %v5013_v20, %v165_v27  ;;  %v173_v42 = vsub.f32 %v5016_v21, %v172_v29  ;;  %v5058_v43 = vsub.f32 %v37_v14, %v5022_v25 }
  0x16   :  { %3875 = vmatpush3.msra.mxu0 %v4993_v10  ;;  %v146_v37 = vand.u32 4294901760, %v145_v31  ;;  %v153_v38 = vand.u32 4294901760, %v152_v32  ;;  %v5061_v45 = vand.u32 4294901760, %v34_v36  ;;  %v186_v46 = vand.u32 4294901760, %v5043_v34 }
  0x17   :  { %3876 = vmatprep.subr.mxu0 %v4956_v0  ;;  %v160_v44 = vand.u32 4294901760, %v159_v33  ;;  %v5065_v47 = vsub.f32 %v36_v19, %v5026_v28  ;;  %v5069_v48 = vand.u32 4294901760, %v33_v41  ;;  %v167_v51 = vand.u32 4294901760, %v166_v39 }
  0x18   :  { %3877 = vmatpush3.msra.mxu0 %v4995_v11  ;;  %3904 = vmatpush3.msra.mxu1 %v146_v37  ;;  %v180_v52 = vsub.f32 %v5030_v30, %v179_v40  ;;  %v193_v53 = vand.u32 4294901760, %v5058_v43  ;;  %v5080_v55 = vsub.f32 %v35_v26, %v5046_v35  ;;  %v174_v56 = vand.u32 4294901760, %v173_v42 }
  0x19   :  { %3878 = vmatprep.subr.mxu0 %v4956_v0  ;;  %3905 = vmatprep.subr.mxu1 %v4956_v0  ;;  %v200_v57 = vand.u32 4294901760, %v5065_v47  ;;  %v187_v58 = vsub.f32 %v5043_v34, %v186_v46  ;;  %v5089_v59 = vand.u32 4294901760, %v32_v49  ;;  %v5092_v61 = vsub.f32 %v34_v36, %v5061_v45 }
  0x1a   :  { %3879 = vmatpush3.msra.mxu0 %v4997_v12  ;;  %3906 = vmatpush3.msra.mxu1 %v153_v38  ;;  %v5094_v62 = vand.u32 4294901760, %v28_v50  ;;  %v5098_v63 = vand.u32 4294901760, %v31_v54  ;;  %v181_v1 = vand.u32 4294901760, %v180_v52  ;;  %v194_v2 = vsub.f32 %v5058_v43, %v193_v53 }
  0x1b   :  { %3880 = vmatprep.subr.mxu0 %v4956_v0  ;;  %3907 = vmatprep.subr.mxu1 %v4956_v0  ;;  %v207_v3 = vand.u32 4294901760, %v5080_v55  ;;  %v5106_v8 = vsub.f32 %v33_v41, %v5069_v48  ;;  %v201_v9 = vsub.f32 %v5065_v47, %v200_v57  ;;  %v5113_v13 = vand.u32 4294901760, %v30_v60 }
  0x1c   :  { %3881 = vmatpush3.msra.mxu0 %v5006_v17  ;;  %3908 = vmatpush3.msra.mxu1 %v160_v44  ;;  %v188_v14 = vand.u32 4294901760, %v187_v58  ;;  %v214_v19 = vand.u32 4294901760, %v5092_v61  ;;  %v5118_v26 = vsub.f32 %v28_v50, %v5094_v62  ;;  %v5121_v31 = vsub.f32 %v32_v49, %v5089_v59 }
  0x1d   :  { %3882 = vmatprep.subr.mxu0 %v4956_v0  ;;  %3909 = vmatprep.subr.mxu1 %v4956_v0  ;;  %v5125_v32 = vand.u32 4294901760, %v29_v7  ;;  %v195_v33 = vand.u32 4294901760, %v194_v2  ;;  %v208_v36 = vsub.f32 %v5080_v55, %v207_v3  ;;  %v221_v37 = vand.u32 4294901760, %v5106_v8 }
  0x1e   :  { %3883 = vmatpush3.msra.mxu0 %v5022_v25  ;;  %3910 = vmatpush3.msra.mxu1 %v167_v51  ;;  %v5133_v38 = vsub.f32 %v31_v54, %v5098_v63  ;;  %v202_v39 = vand.u32 4294901760, %v201_v9  ;;  %v215_v41 = vsub.f32 %v5092_v61, %v214_v19  ;;  %v133_v42 = vand.u32 4294901760, %v5118_v26 }
  0x1f   :  { %3884 = vmatprep.subr.mxu0 %v4956_v0  ;;  %3911 = vmatprep.subr.mxu1 %v4956_v0  ;;  %v228_v44 = vand.u32 4294901760, %v5121_v31  ;;  %v5144_v49 = vsub.f32 %v30_v60, %v5113_v13  ;;  %v209_v50 = vand.u32 4294901760, %v208_v36  ;;  %v222_v51 = vsub.f32 %v5106_v8, %v221_v37 }
  0x20   :  { %3885 = vmatpush3.msra.mxu0 %v5026_v28  ;;  %3912 = vmatpush3.msra.mxu1 %v174_v56  ;;  %v235_v52 = vand.u32 4294901760, %v5133_v38  ;;  %v5154_v54 = vsub.f32 %v29_v7, %v5125_v32  ;;  %v216_v56 = vand.u32 4294901760, %v215_v41  ;;  %v134_v58 = vsub.f32 %v5118_v26, %v133_v42 }
  0x21   :  { %3886 = vmatprep.subr.mxu0 %v4956_v0  ;;  %3913 = vmatprep.subr.mxu1 %v4956_v0  ;;  %v229_v60 = vsub.f32 %v5121_v31, %v228_v44  ;;  %v223_v2 = vand.u32 4294901760, %v222_v51 }
  0x22   :  { %3887 = vmatpush3.msra.mxu0 %v5046_v35  ;;  %3914 = vmatpush3.msra.mxu1 %v181_v1  ;;  %v242_v1 = vand.u32 4294901760, %v5144_v49  ;;  %v236_v7 = vsub.f32 %v5133_v38, %v235_v52  ;;  %v249_v9 = vand.u32 4294901760, %v5154_v54 }
  0x23   :  { %3888 = vmatprep.subr.mxu0 %v4956_v0  ;;  %3915 = vmatprep.subr.mxu1 %v4956_v0 }
  0x24   :  { %3889 = vmatpush3.msra.mxu0 %v5061_v45  ;;  %3916 = vmatpush3.msra.mxu1 %v188_v14  ;;  %v135_v14 = vand.u32 4294901760, %v134_v58  ;;  %v243_v36 = vsub.f32 %v5144_v49, %v242_v1  ;;  %v250_v41 = vsub.f32 %v5154_v54, %v249_v9  ;;  %v698_v58 = vld [vmem:[#allocation2 + $0xa8] sm:$0xff] }
  0x25   :  { %3890 = vmatprep.subr.mxu0 %v4956_v0  ;;  %3917 = vmatprep.subr.mxu1 %v4956_v0 }
  0x26   :  { %3891 = vmatpush3.msra.mxu0 %v5069_v48  ;;  %3918 = vmatpush3.msra.mxu1 %v195_v33  ;;  %v230_v33 = vand.u32 4294901760, %v229_v60  ;;  %v251_v51 = vand.u32 4294901760, %v250_v41 }
  0x27   :  { %3892 = vmatprep.subr.mxu0 %v4956_v0  ;;  %3919 = vmatprep.subr.mxu1 %v4956_v0 }
  0x28   :  { %3893 = vmatpush3.msra.mxu0 %v5089_v59  ;;  %3920 = vmatpush3.msra.mxu1 %v202_v39  ;;  %v237_v39 = vand.u32 4294901760, %v236_v7  ;;  %v5455_v7 = vand.u32 4294901760, %v698_v58 }
  0x29   :  { %3894 = vmatprep.subr.mxu0 %v4956_v0  ;;  %3921 = vmatprep.subr.mxu1 %v4956_v0 }
  0x2a   :  { %3895 = vmatpush3.msra.mxu0 %v5098_v63  ;;  %3922 = vmatpush3.msra.mxu1 %v209_v50  ;;  %v244_v50 = vand.u32 4294901760, %v243_v36 }
  0x2b   :  { %3896 = vmatprep.subr.mxu0 %v4956_v0  ;;  %3923 = vmatprep.subr.mxu1 %v4956_v0 }
  0x2c   :  { %3897 = vmatpush3.msra.mxu0 %v5113_v13  ;;  %3924 = vmatpush3.msra.mxu1 %v216_v56 }
  0x2d   :  { %3898 = vmatprep.subr.mxu0 %v4956_v0  ;;  %3925 = vmatprep.subr.mxu1 %v4956_v0 }
  0x2e   :  { %3899 = vmatpush3.msra.mxu0 %v5125_v32  ;;  %3926 = vmatpush3.msra.mxu1 %v223_v2 }
  0x2f   :  { %3927 = vmatprep.subr.mxu1 %v4956_v0  ;;  %3938 = vmatprep.subr.mxu0 %v4956_v0 }
  0x30   :  { %3901 = vmatmul.mubr.f32.vlgmr.msra.gmra.mxu0 %v135_v14  ;;  %3928 = vmatpush3.msra.mxu1 %v230_v33  ;;  %v697_v14 = vld [vmem:[#allocation2 + $0xa0] sm:$0xff] }
  0x31   :  { %3939 = vmatpush3.msra.mxu0 %v5001_v15  ;;  %3929 = vmatprep.subr.mxu1 %v4956_v0  ;;  %v5470_v41 = vand.u32 4294901760, %v697_v14 }
  0x32   :  { %3940 = vmatprep.subr.mxu0 %v4956_v0  ;;  %3930 = vmatpush3.msra.mxu1 %v237_v39  ;;  %v5468_v39 = vsub.f32 %v698_v58, %v5455_v7 }
  0x33   :  { %3941 = vmatpush3.msra.mxu0 %v5004_v16  ;;  %3931 = vmatprep.subr.mxu1 %v4956_v0 }
  0x34   :  { %3942 = vmatprep.subr.mxu0 %v4956_v0  ;;  %3932 = vmatpush3.msra.mxu1 %v244_v50 }
  0x35   :  { %3943 = vmatpush3.msra.mxu0 %v5009_v18  ;;  %3933 = vmatprep.subr.mxu1 %v4956_v0 }
  0x36   :  { %3944 = vmatprep.subr.mxu0 %v4956_v0  ;;  %3934 = vmatpush3.msra.mxu1 %v251_v51  ;;  %v696_v51 = vld [vmem:[#allocation2 + $0x98] sm:$0xff] }
  0x37   :  { %3945 = vmatpush3.msra.mxu0 %v5013_v20  ;;  %3936 = vmatmul.mubr.f32.vlgmr.msra.gmra.mxu1 %v5094_v62 }
  0x38   :  { %3946 = vmatprep.subr.mxu0 %v4956_v0  ;;  %3973 = vmatprep.subr.mxu1 %v4956_v0 }
  0x39   :  { %3947 = vmatpush3.msra.mxu0 %v5016_v21  ;;  %3974 = vmatpush3.msra.mxu1 %v4987_v4 }
  0x3a   :  { %3948 = vmatprep.subr.mxu0 %v4956_v0  ;;  %3975 = vmatprep.subr.mxu1 %v4956_v0 }
  0x3b   :  { %3949 = vmatpush3.msra.mxu0 %v5030_v30  ;;  %3976 = vmatpush3.msra.mxu1 %v4989_v5 }
  0x3c   :  { %3950 = vmatprep.subr.mxu0 %v4956_v0  ;;  %3977 = vmatprep.subr.mxu1 %v4956_v0 }
  0x3d   :  { %3951 = vmatpush3.msra.mxu0 %v5043_v34  ;;  %3978 = vmatpush3.msra.mxu1 %v4991_v6  ;;  %v704_v34 = vld [vmem:[#allocation2 + $0xd8] sm:$0xff] }
  0x3e   :  { %3952 = vmatprep.subr.mxu0 %v4956_v0  ;;  %3979 = vmatprep.subr.mxu1 %v4956_v0 }
  0x3f   :  { %3953 = vmatpush3.msra.mxu0 %v5058_v43  ;;  %3980 = vmatpush3.msra.mxu1 %v4993_v10  ;;  %v703_v43 = vld [vmem:[#allocation2 + $0xd0] sm:$0xff] }
  0x40   :  { %3954 = vmatprep.subr.mxu0 %v4956_v0  ;;  %3981 = vmatprep.subr.mxu1 %v4956_v0 }
  0x41   :  { %3955 = vmatpush3.msra.mxu0 %v5065_v47  ;;  %3982 = vmatpush3.msra.mxu1 %v4995_v11  ;;  %v5402_v47 = vand.u32 4294901760, %v703_v43 }
  0x42   :  { %3956 = vmatprep.subr.mxu0 %v4956_v0  ;;  %3983 = vmatprep.subr.mxu1 %v4956_v0 }
  0x43   :  { %3957 = vmatpush3.msra.mxu0 %v5080_v55  ;;  %3984 = vmatpush3.msra.mxu1 %v4997_v12 }
  0x44   :  { %3958 = vmatprep.subr.mxu0 %v4956_v0  ;;  %3985 = vmatprep.subr.mxu1 %v4956_v0 }
  0x45   :  { %3959 = vmatpush3.msra.mxu0 %v5092_v61  ;;  %3986 = vmatpush3.msra.mxu1 %v5006_v17  ;;  %v701_v61 = vld [vmem:[#allocation2 + $0xc0] sm:$0xff] }
  0x46   :  { %3960 = vmatprep.subr.mxu0 %v4956_v0  ;;  %3987 = vmatprep.subr.mxu1 %v4956_v0 }
  0x47   :  { %3961 = vmatpush3.msra.mxu0 %v5106_v8  ;;  %3988 = vmatpush3.msra.mxu1 %v5022_v25 }
  0x48   :  { %3962 = vmatprep.subr.mxu0 %v4956_v0  ;;  %3989 = vmatprep.subr.mxu1 %v4956_v0 }
  0x49   :  { %3963 = vmatpush3.msra.mxu0 %v5121_v31  ;;  %3990 = vmatpush3.msra.mxu1 %v5026_v28 }
  0x4a   :  { %3964 = vmatprep.subr.mxu0 %v4956_v0  ;;  %3991 = vmatprep.subr.mxu1 %v4956_v0 }
  0x4b   :  { %3965 = vmatpush3.msra.mxu0 %v5133_v38  ;;  %3992 = vmatpush3.msra.mxu1 %v5046_v35 }
  0x4c   :  { %3966 = vmatprep.subr.mxu0 %v4956_v0  ;;  %3993 = vmatprep.subr.mxu1 %v4956_v0 }
  0x4d   :  { %3967 = vmatpush3.msra.mxu0 %v5144_v49  ;;  %3994 = vmatpush3.msra.mxu1 %v5061_v45 }
  0x4e   :  { %3968 = vmatprep.subr.mxu0 %v4956_v0  ;;  %3995 = vmatprep.subr.mxu1 %v4956_v0 }
  0x4f   :  { %3969 = vmatpush3.msra.mxu0 %v5154_v54  ;;  %3970 = vmatprep.mubr.msk.f32.mxu0 %vm4957_vm0, %v4956_v0 }
  0x50   :  { %3996 = vmatpush3.msra.mxu1 %v5069_v48  ;;  %3971 = vmatmul.mubr.f32.vlgmr.msra.gmra.mxu0 %v5118_v26 }
  0x51   :  { %3997 = vmatprep.subr.mxu1 %v4956_v0  ;;  %4008 = vmatprep.subr.mxu0 %v4956_v0 }
  0x52   :  { %3998 = vmatpush3.msra.mxu1 %v5089_v59  ;;  %4009 = vmatpush3.msra.mxu0 %v144_v22 }
  0x53   :  { %3999 = vmatprep.subr.mxu1 %v4956_v0  ;;  %4010 = vmatprep.subr.mxu0 %v4956_v0 }
  0x54   :  { %4000 = vmatpush3.msra.mxu1 %v5098_v63  ;;  %4011 = vmatpush3.msra.mxu0 %v151_v23 }
  0x55   :  { %4001 = vmatprep.subr.mxu1 %v4956_v0  ;;  %4012 = vmatprep.subr.mxu0 %v4956_v0 }
  0x56   :  { %4002 = vmatpush3.msra.mxu1 %v5113_v13  ;;  %4013 = vmatpush3.msra.mxu0 %v158_v24 }
  0x57   :  { %4003 = vmatprep.subr.mxu1 %v4956_v0  ;;  %4014 = vmatprep.subr.mxu0 %v4956_v0 }
  0x58   :  { %4004 = vmatpush3.msra.mxu1 %v5125_v32  ;;  %4005 = vmatprep.mubr.msk.f32.mxu1 %vm4957_vm0, %v4956_v0 }
  0x59   :  { %4015 = vmatpush3.msra.mxu0 %v165_v27  ;;  %4006 = vmatmul.mubr.f32.vlgmr.msra.gmra.mxu1 %v133_v42  ;;  %v699_v42 = vld [vmem:[#allocation2 + $0xb0] sm:$0xff] }
  0x5a   :  { %4016 = vmatprep.subr.mxu0 %v4956_v0  ;;  %4043 = vmatprep.subr.mxu1 %v4956_v0  ;;  %v5445_v54 = vand.u32 4294901760, %v699_v42 }
  0x5b   :  { %4017 = vmatpush3.msra.mxu0 %v172_v29  ;;  %4044 = vmatpush3.msra.mxu1 %v4987_v4  ;;  %v708_v4 = vld [vmem:[#allocation2 + $0xf8] sm:$0xff]  ;;  %v705_v29 = vld [vmem:[#allocation2 + $0xe0] sm:$0xff] }
  0x5c   :  { %4018 = vmatprep.subr.mxu0 %v4956_v0  ;;  %4045 = vmatprep.subr.mxu1 %v4956_v0  ;;  %v5388_v30 = vand.u32 4294901760, %v705_v29  ;;  %v5453_v2 = vsub.f32 %v699_v42, %v5445_v54 }
  0x5d   :  { %4019 = vmatpush3.msra.mxu0 %v179_v40  ;;  %4046 = vmatpush3.msra.mxu1 %v4989_v5  ;;  %v707_v5 = vld [vmem:[#allocation2 + $0xf0] sm:$0xff]  ;;  %v5394_v40 = vand.u32 4294901760, %v704_v34 }
  0x5e   :  { %4020 = vmatprep.subr.mxu0 %v4956_v0  ;;  %4047 = vmatprep.subr.mxu1 %v4956_v0  ;;  %v871_v36 = vand.u32 4294901760, %v5453_v2 }
  0x5f   :  { %4021 = vmatpush3.msra.mxu0 %v186_v46  ;;  %4048 = vmatpush3.msra.mxu1 %v4991_v6  ;;  %v706_v6 = vld [vmem:[#allocation2 + $0xe8] sm:$0xff]  ;;  %v5400_v46 = vsub.f32 %v704_v34, %v5394_v40 }
  0x60   :  { %4022 = vmatprep.subr.mxu0 %v4956_v0  ;;  %4049 = vmatprep.subr.mxu1 %v4956_v0  ;;  %v694_v34 = vld [vmem:[#allocation2 + $0x88] sm:$0xff] }
  0x61   :  { %4023 = vmatpush3.msra.mxu0 %v193_v53  ;;  %4050 = vmatpush3.msra.mxu1 %v4993_v10  ;;  %v5353_v10 = vand.u32 4294901760, %v708_v4  ;;  %v836_v55 = vand.u32 4294901760, %v5400_v46 }
  0x62   :  { %4024 = vmatprep.subr.mxu0 %v4956_v0  ;;  %4051 = vmatprep.subr.mxu1 %v4956_v0 }
  0x63   :  { %4025 = vmatpush3.msra.mxu0 %v200_v57  ;;  %4052 = vmatpush3.msra.mxu1 %v4995_v11  ;;  %v5355_v11 = vand.u32 4294901760, %v707_v5  ;;  %v5360_v15 = vsub.f32 %v708_v4, %v5353_v10  ;;  %v5411_v57 = vsub.f32 %v703_v43, %v5402_v47  ;;  %v693_v43 = vld [vmem:[#allocation2 + $0x80] sm:$0xff] }
  0x64   :  { %4026 = vmatprep.subr.mxu0 %v4956_v0  ;;  %4053 = vmatprep.subr.mxu1 %v4956_v0 }
  0x65   :  { %4027 = vmatpush3.msra.mxu0 %v207_v3  ;;  %4054 = vmatpush3.msra.mxu1 %v4997_v12  ;;  %v5357_v12 = vand.u32 4294901760, %v706_v6  ;;  %v5363_v16 = vsub.f32 %v707_v5, %v5355_v11  ;;  %v808_v18 = vand.u32 4294901760, %v5360_v15  ;;  %v843_v3 = vand.u32 4294901760, %v5411_v57 }
  0x66   :  { %4028 = vmatprep.subr.mxu0 %v4956_v0  ;;  %4055 = vmatprep.subr.mxu1 %v4956_v0  ;;  %v872_v5 = vsub.f32 %v5453_v2, %v871_v36 }
  0x67   :  { %4029 = vmatpush3.msra.mxu0 %v214_v19  ;;  %4056 = vmatpush3.msra.mxu1 %v5006_v17  ;;  %v5366_v17 = vsub.f32 %v706_v6, %v5357_v12  ;;  %v815_v20 = vand.u32 4294901760, %v5363_v16  ;;  %v809_v22 = vsub.f32 %v5360_v15, %v808_v18  ;;  %v700_v19 = vld [vmem:[#allocation2 + $0xb8] sm:$0xff]  ;;  %v844_v31 = vsub.f32 %v5411_v57, %v843_v3 }
  0x68   :  { %4030 = vmatprep.subr.mxu0 %v4956_v0  ;;  %4057 = vmatprep.subr.mxu1 %v4956_v0  ;;  %v878_v6 = vand.u32 4294901760, %v5468_v39 }
  0x69   :  { %4031 = vmatpush3.msra.mxu0 %v221_v37  ;;  %4058 = vmatpush3.msra.mxu1 %v5022_v25  ;;  %v822_v21 = vand.u32 4294901760, %v5366_v17  ;;  %v816_v23 = vsub.f32 %v5363_v16, %v815_v20  ;;  %v810_v25 = vand.u32 4294901760, %v809_v22  ;;  %v5432_v37 = vand.u32 4294901760, %v700_v19 }
  0x6a   :  { %4032 = vmatprep.subr.mxu0 %v4956_v0  ;;  %4059 = vmatprep.subr.mxu1 %v4956_v0  ;;  %v5480_v22 = vsub.f32 %v697_v14, %v5470_v41 }
  0x6b   :  { %4033 = vmatpush3.msra.mxu0 %v228_v44  ;;  %4060 = vmatpush3.msra.mxu1 %v5026_v28  ;;  %v823_v24 = vsub.f32 %v5366_v17, %v822_v21  ;;  %v817_v27 = vand.u32 4294901760, %v816_v23  ;;  %v845_v44 = vand.u32 4294901760, %v844_v31  ;;  %v5483_v23 = vand.u32 4294901760, %v696_v51 }
  0x6c   :  { %4034 = vmatprep.subr.mxu0 %v4956_v0  ;;  %4061 = vmatprep.subr.mxu1 %v4956_v0 }
  0x6d   :  { %4035 = vmatpush3.msra.mxu0 %v235_v52  ;;  %4062 = vmatpush3.msra.mxu1 %v5046_v35  ;;  %v824_v28 = vand.u32 4294901760, %v823_v24  ;;  %v5392_v35 = vsub.f32 %v705_v29, %v5388_v30  ;;  %v5443_v52 = vsub.f32 %v700_v19, %v5432_v37  ;;  %v695_v24 = vld [vmem:[#allocation2 + $0x90] sm:$0xff] }
  0x6e   :  { %4036 = vmatprep.subr.mxu0 %v4956_v0  ;;  %4063 = vmatprep.subr.mxu1 %v4956_v0  ;;  %v5491_v29 = vand.u32 4294901760, %v695_v24 }
  0x6f   :  { %4037 = vmatpush3.msra.mxu0 %v242_v1  ;;  %4064 = vmatpush3.msra.mxu1 %v5061_v45  ;;  %v829_v45 = vand.u32 4294901760, %v5392_v35  ;;  %v864_v1 = vand.u32 4294901760, %v5443_v52 }
  0x70   :  { %4038 = vmatprep.subr.mxu0 %v4956_v0  ;;  %4065 = vmatprep.subr.mxu1 %v4956_v0  ;;  %v5507_v19 = vsub.f32 %v695_v24, %v5491_v29 }
  0x71   :  { %4039 = vmatpush3.msra.mxu0 %v249_v9  ;;  %4040 = vmatprep.mubr.msk.f32.mxu0 %vm4957_vm0, %v4956_v0  ;;  %v830_v53 = vsub.f32 %v5392_v35, %v829_v45  ;;  %v865_v33 = vsub.f32 %v5443_v52, %v864_v1 }
  0x72   :  { %4066 = vmatpush3.msra.mxu1 %v5069_v48  ;;  %4041 = vmatmul.mubr.f32.vlgmr.msra.gmra.mxu0 %v5094_v62  ;;  %v702_v48 = vld [vmem:[#allocation2 + $0xc8] sm:$0xff] }
  0x73   :  { %4067 = vmatprep.subr.mxu1 %v4956_v0  ;;  %4075 = vmatprep.mubr.msk.f32.mxu1 %vm4957_vm0, %v4956_v0  ;;  %v866_v4 = vand.u32 4294901760, %v865_v33 }
  0x74   :  { %4068 = vmatpush3.msra.mxu1 %v5089_v59  ;;  %4078 = vmatprep.subr.mxu0 %v4956_v0  ;;  %v5413_v59 = vand.u32 4294901760, %v702_v48 }
  0x75   :  { %4069 = vmatprep.subr.mxu1 %v4956_v0  ;;  %4110 = vmatprep.mubr.msk.f32.mxu0 %vm4957_vm0, %v4956_v0 }
  0x76   :  { %4070 = vmatpush3.msra.mxu1 %v5098_v63  ;;  %4079 = vmatpush3.msra.mxu0 %v5353_v10  ;;  %v837_v63 = vsub.f32 %v5400_v46, %v836_v55  ;;  %v5422_v8 = vsub.f32 %v702_v48, %v5413_v59  ;;  %v5495_v48 = vsub.f32 %v696_v51, %v5483_v23 }
  0x77   :  { %4071 = vmatprep.subr.mxu1 %v4956_v0  ;;  %4080 = vmatprep.subr.mxu0 %v4956_v0 }
  0x78   :  { %4072 = vmatpush3.msra.mxu1 %v5113_v13  ;;  %4081 = vmatpush3.msra.mxu0 %v5355_v11  ;;  %v5425_v13 = vand.u32 4294901760, %v701_v61  ;;  %v838_v26 = vand.u32 4294901760, %v837_v63 }
  0x79   :  { %4073 = vmatprep.subr.mxu1 %v4956_v0  ;;  %4082 = vmatprep.subr.mxu0 %v4956_v0 }
  0x7a   :  { %4074 = vmatpush3.msra.mxu1 %v5125_v32  ;;  %4083 = vmatpush3.msra.mxu0 %v5357_v12  ;;  %v850_v32 = vand.u32 4294901760, %v5422_v8  ;;  %v5436_v38 = vsub.f32 %v701_v61, %v5425_v13  ;;  %v5499_v61 = vand.u32 4294901760, %v693_v43 }
  0x7b   :  { %4076 = vmatmul.mubr.f32.vlgmr.msra.gmra.mxu1 %v5094_v62  ;;  %4113 = vmatprep.subr.mxu1 %v4956_v0  ;;  %v831_v62 = vand.u32 4294901760, %v830_v53  ;;  %v5497_v53 = vand.u32 4294901760, %v694_v34 }
  0x7c   :  { %4145 = vmatprep.mubr.msk.f32.mxu1 %vm4957_vm0, %v4956_v0  ;;  %4084 = vmatprep.subr.mxu0 %v4956_v0  ;;  %v851_v49 = vsub.f32 %v5422_v8, %v850_v32  ;;  %v857_v56 = vand.u32 4294901760, %v5436_v38  ;;  %v5515_v42 = vsub.f32 %v693_v43, %v5499_v61 }
  0x7d   :  { %4114 = vmatpush3.msra.mxu1 %v810_v25  ;;  %4085 = vmatpush3.msra.mxu0 %v5388_v30  ;;  %v873_v25 = vand.u32 4294901760, %v872_v5  ;;  %v5512_v31 = vsub.f32 %v694_v34, %v5497_v53 }
  0x7e   :  { %4115 = vmatprep.subr.mxu1 %v4956_v0  ;;  %4086 = vmatprep.subr.mxu0 %v4956_v0  ;;  %v852_v60 = vand.u32 4294901760, %v851_v49  ;;  %v858_v9 = vsub.f32 %v5436_v38, %v857_v56  ;;  %v6807_v49 = vand.u32 4294901760, %v5507_v19 }
  0x7f   :  { %4116 = vmatpush3.msra.mxu1 %v817_v27  ;;  %4087 = vmatpush3.msra.mxu0 %v5394_v40  ;;  %v879_v27 = vsub.f32 %v5468_v39, %v878_v6 }
  0x80   :  { %4117 = vmatprep.subr.mxu1 %v4956_v0  ;;  %4088 = vmatprep.subr.mxu0 %v4956_v0  ;;  %v859_v50 = vand.u32 4294901760, %v858_v9  ;;  %v6805_v9 = vand.u32 4294901760, %v5515_v42  ;;  %v900_v14 = vsub.f32 %v5507_v19, %v6807_v49 }
  0x81   :  { %4118 = vmatpush3.msra.mxu1 %v824_v28  ;;  %4089 = vmatpush3.msra.mxu0 %v5402_v47  ;;  %v885_v28 = vand.u32 4294901760, %v5480_v22 }
  0x82   :  { %4119 = vmatprep.subr.mxu1 %v4956_v0  ;;  %4090 = vmatprep.subr.mxu0 %v4956_v0  ;;  %v914_v51 = vsub.f32 %v5515_v42, %v6805_v9 }
  0x83   :  { %4091 = vmatpush3.msra.mxu0 %v5413_v59  ;;  %4120 = vmatpush3.msra.mxu1 %v831_v62  ;;  %v880_v62 = vand.u32 4294901760, %v879_v27  ;;  %v886_v63 = vsub.f32 %v5480_v22, %v885_v28 }
  0x84   :  { %4092 = vmatprep.subr.mxu0 %v4956_v0  ;;  %4121 = vmatprep.subr.mxu1 %v4956_v0  ;;  %v915_v24 = vand.u32 4294901760, %v914_v51 }
  0x85   :  { %4093 = vmatpush3.msra.mxu0 %v5425_v13  ;;  %4122 = vmatpush3.msra.mxu1 %v838_v26  ;;  %v6808_v26 = vand.u32 4294901760, %v5495_v48 }
  0x86   :  { %4094 = vmatprep.subr.mxu0 %v4956_v0  ;;  %4123 = vmatprep.subr.mxu1 %v4956_v0 }
  0x87   :  { %4095 = vmatpush3.msra.mxu0 %v5432_v37  ;;  %4124 = vmatpush3.msra.mxu1 %v845_v44  ;;  %v887_v44 = vand.u32 4294901760, %v886_v63  ;;  %v893_v58 = vsub.f32 %v5495_v48, %v6808_v26 }
  0x88   :  { %4096 = vmatprep.subr.mxu0 %v4956_v0  ;;  %4125 = vmatprep.subr.mxu1 %v4956_v0 }
  0x89   :  { %4097 = vmatpush3.msra.mxu0 %v5445_v54  ;;  %4126 = vmatpush3.msra.mxu1 %v852_v60  ;;  %v6806_v60 = vand.u32 4294901760, %v5512_v31  ;;  %v894_v33 = vand.u32 4294901760, %v893_v58 }
  0x8a   :  { %4098 = vmatprep.subr.mxu0 %v4956_v0  ;;  %4127 = vmatprep.subr.mxu1 %v4956_v0 }
  0x8b   :  { %4099 = vmatpush3.msra.mxu0 %v5455_v7  ;;  %4128 = vmatpush3.msra.mxu1 %v859_v50  ;;  %v907_v50 = vsub.f32 %v5512_v31, %v6806_v60 }
  0x8c   :  { %4100 = vmatprep.subr.mxu0 %v4956_v0  ;;  %4129 = vmatprep.subr.mxu1 %v4956_v0 }
  0x8d   :  { %4101 = vmatpush3.msra.mxu0 %v5470_v41  ;;  %4130 = vmatpush3.msra.mxu1 %v866_v4  ;;  %v901_v4 = vand.u32 4294901760, %v900_v14  ;;  %v908_v5 = vand.u32 4294901760, %v907_v50  ;;  %v3353_v14 = vld [vmem:[%s6803_s2] ss:$0 sm:$0xff] }
  0x8e   :  { %4102 = vmatprep.subr.mxu0 %v4956_v0  ;;  %4131 = vmatprep.subr.mxu1 %v4956_v0 }
  0x8f   :  { %4103 = vmatpush3.msra.mxu0 %v5483_v23  ;;  %4132 = vmatpush3.msra.mxu1 %v873_v25 }
  0x90   :  { %4104 = vmatprep.subr.mxu0 %v4956_v0  ;;  %4133 = vmatprep.subr.mxu1 %v4956_v0 }
  0x91   :  { %4105 = vmatpush3.msra.mxu0 %v5491_v29  ;;  %4134 = vmatpush3.msra.mxu1 %v880_v62 }
  0x92   :  { %4106 = vmatprep.subr.mxu0 %v4956_v0  ;;  %4135 = vmatprep.subr.mxu1 %v4956_v0 }
  0x93   :  { %4107 = vmatpush3.msra.mxu0 %v5497_v53  ;;  %4136 = vmatpush3.msra.mxu1 %v887_v44 }
  0x94   :  { %4108 = vmatprep.subr.mxu0 %v4956_v0  ;;  %4137 = vmatprep.subr.mxu1 %v4956_v0 }
  0x95   :  { %4109 = vmatpush3.msra.mxu0 %v5499_v61  ;;  %4138 = vmatpush3.msra.mxu1 %v894_v33 }
  0x96   :  { %4148 = vmatprep.subr.mxu0 %v4956_v0  ;;  %4139 = vmatprep.subr.mxu1 %v4956_v0 }
  0x97   :  { %4140 = vmatpush3.msra.mxu1 %v901_v4 }
  0x98   :  { %4141 = vmatprep.subr.mxu1 %v4956_v0 }
  0x99   :  { %4142 = vmatpush3.msra.mxu1 %v908_v5 }
  0x9a   :  { %4143 = vmatprep.subr.mxu1 %v4956_v0 }
  0x9b   :  { %4144 = vmatpush3.msra.mxu1 %v915_v24 }
  0x9c   :  { %4183 = vmatprep.subr.mxu1 %v4956_v0 }
  0xf0   :  { %v137_v25 = vpop.f32.mrf.mxu0 }
  0xf1   :  { %v138_v33 = vadd.f32 %v3353_v14, %v137_v25 }
  0xf2   :  { %v3902_v27 = vpop.f32.mrf.mxu0 }
  0xf7   :  { %v288_v34 = vpop.f32.mrf.mxu1 }
  0xf8   :  { %v289_v51 = vadd.f32 %v288_v34, %v138_v33 }
  0xf9   :  { %v3937_v43 = vpop.f32.mrf.mxu1 }
 0x110   :  { %v392_v62 = vpop.f32.mrf.mxu0 }
 0x111   :  { %v393_v5 = vadd.f32 %v392_v62, %v289_v51 }
 0x112   :  { %v3972_v63 = vpop.f32.mrf.mxu0 }
 0x119   :  { %v481_v44 = vpop.f32.mrf.mxu1 }
 0x11a   :  { %v482_v24 = vadd.f32 %v481_v44, %v393_v5  ;;  %v1363_v44 = vld [vmem:[#allocation2 + $0x130] sm:$0xff] }
 0x11b   :  { %v4007_v58 = vpop.f32.mrf.mxu1 }
 0x132   :  { %v600_v50 = vpop.f32.mrf.mxu0 }
 0x133   :  { %v601_v9 = vadd.f32 %v600_v50, %v482_v24  ;;  %v5805_v50 = vand.u32 4294901760, %v1363_v44 }
 0x134   :  { %v4042_v4 = vpop.f32.mrf.mxu0 }
 0x135   :  { %v1362_v4 = vld [vmem:[#allocation2 + $0x128] sm:$0xff] }
 0x13b   :  { %v687_v60 = vpop.f32.mrf.mxu1 }
 0x13c   :  { %v688_v49 = vadd.f32 %v687_v60, %v601_v9 }
 0x13d   :  { %v4077_v27 = vpop.f32.mrf.mxu1 }
 0x13e   :  { %4923 = vtanh.f32 %v688_v49  ;;  %v5818_v27 = vsub.f32 %v1363_v44, %v5805_v50 }
 0x14b   :  { %v4924_v43 = vpop.eup %4923 }
 0x14c   :  { %v5548_v26 = vand.u32 4294901760, %v4924_v43 }
 0x14e   :  { %4146 = vmatmul.mubr.f32.vlgmr.msra.gmra.mxu1 %v5548_v26  ;;  %v5552_v63 = vsub.f32 %v4924_v43, %v5548_v26  ;;  %v5820_v43 = vand.u32 4294901760, %v1362_v4 }
 0x14f   :  { %4184 = vmatpush3.msra.mxu1 %v5353_v10  ;;  %4215 = vmatprep.mubr.msk.f32.mxu1 %vm4957_vm0, %v4956_v0 }
 0x150   :  { %4185 = vmatprep.subr.mxu1 %v4956_v0  ;;  %v797_v25 = vand.u32 4294901760, %v5552_v63 }
 0x151   :  { %4186 = vmatpush3.msra.mxu1 %v5355_v11 }
 0x152   :  { %4187 = vmatprep.subr.mxu1 %v4956_v0  ;;  %v798_v49 = vsub.f32 %v5552_v63, %v797_v25 }
 0x153   :  { %4188 = vmatpush3.msra.mxu1 %v5357_v12 }
 0x154   :  { %4189 = vmatprep.subr.mxu1 %v4956_v0  ;;  %v799_v60 = vand.u32 4294901760, %v798_v49 }
 0x155   :  { %4190 = vmatpush3.msra.mxu1 %v5388_v30 }
 0x156   :  { %4191 = vmatprep.subr.mxu1 %v4956_v0  ;;  %4111 = vmatmul.mubr.f32.vlgmr.msra.gmra.mxu0 %v799_v60 }
 0x157   :  { %4149 = vmatpush3.msra.mxu0 %v5360_v15  ;;  %4192 = vmatpush3.msra.mxu1 %v5394_v40  ;;  %v6824_v15 = vand.u32 4294901760, %v5515_v42 }
 0x158   :  { %4150 = vmatprep.subr.mxu0 %v4956_v0  ;;  %4193 = vmatprep.subr.mxu1 %v4956_v0 }
 0x159   :  { %4151 = vmatpush3.msra.mxu0 %v5363_v16  ;;  %4194 = vmatpush3.msra.mxu1 %v5402_v47  ;;  %v1372_v16 = vld [vmem:[#allocation2 + $0x178] sm:$0xff] }
 0x15a   :  { %4152 = vmatprep.subr.mxu0 %v4956_v0  ;;  %4195 = vmatprep.subr.mxu1 %v4956_v0 }
 0x15b   :  { %4153 = vmatpush3.msra.mxu0 %v5366_v17  ;;  %4196 = vmatpush3.msra.mxu1 %v5413_v59  ;;  %v1371_v17 = vld [vmem:[#allocation2 + $0x170] sm:$0xff] }
 0x15c   :  { %4154 = vmatprep.subr.mxu0 %v4956_v0  ;;  %4197 = vmatprep.subr.mxu1 %v4956_v0 }
 0x15d   :  { %4155 = vmatpush3.msra.mxu0 %v5392_v35  ;;  %4198 = vmatpush3.msra.mxu1 %v5425_v13 }
 0x15e   :  { %4156 = vmatprep.subr.mxu0 %v4956_v0  ;;  %4199 = vmatprep.subr.mxu1 %v4956_v0 }
 0x15f   :  { %4157 = vmatpush3.msra.mxu0 %v5400_v46  ;;  %4200 = vmatpush3.msra.mxu1 %v5432_v37 }
 0x160   :  { %4158 = vmatprep.subr.mxu0 %v4956_v0  ;;  %4201 = vmatprep.subr.mxu1 %v4956_v0 }
 0x161   :  { %4159 = vmatpush3.msra.mxu0 %v5411_v57  ;;  %4202 = vmatpush3.msra.mxu1 %v5445_v54  ;;  %v1370_v57 = vld [vmem:[#allocation2 + $0x168] sm:$0xff] }
 0x162   :  { %4160 = vmatprep.subr.mxu0 %v4956_v0  ;;  %4203 = vmatprep.subr.mxu1 %v4956_v0 }
 0x163   :  { %4161 = vmatpush3.msra.mxu0 %v5422_v8  ;;  %4204 = vmatpush3.msra.mxu1 %v5455_v7 }
 0x164   :  { %4162 = vmatprep.subr.mxu0 %v4956_v0  ;;  %4205 = vmatprep.subr.mxu1 %v4956_v0 }
 0x165   :  { %4163 = vmatpush3.msra.mxu0 %v5436_v38  ;;  %4206 = vmatpush3.msra.mxu1 %v5470_v41 }
 0x166   :  { %4164 = vmatprep.subr.mxu0 %v4956_v0  ;;  %4207 = vmatprep.subr.mxu1 %v4956_v0 }
 0x167   :  { %4165 = vmatpush3.msra.mxu0 %v5443_v52  ;;  %4208 = vmatpush3.msra.mxu1 %v5483_v23 }
 0x168   :  { %4166 = vmatprep.subr.mxu0 %v4956_v0  ;;  %4209 = vmatprep.subr.mxu1 %v4956_v0 }
 0x169   :  { %4167 = vmatpush3.msra.mxu0 %v5453_v2  ;;  %4210 = vmatpush3.msra.mxu1 %v5491_v29 }
 0x16a   :  { %4168 = vmatprep.subr.mxu0 %v4956_v0  ;;  %4211 = vmatprep.subr.mxu1 %v4956_v0 }
 0x16b   :  { %4169 = vmatpush3.msra.mxu0 %v5468_v39  ;;  %4212 = vmatpush3.msra.mxu1 %v5497_v53 }
 0x16c   :  { %4170 = vmatprep.subr.mxu0 %v4956_v0  ;;  %4213 = vmatprep.subr.mxu1 %v4956_v0 }
 0x16d   :  { %4171 = vmatpush3.msra.mxu0 %v5480_v22  ;;  %4214 = vmatpush3.msra.mxu1 %v5499_v61 }
 0x16e   :  { %4172 = vmatprep.subr.mxu0 %v4956_v0  ;;  %4216 = vmatmul.mubr.f32.vlgmr.msra.gmra.mxu1 %v797_v25  ;;  %v1361_v25 = vld [vmem:[#allocation2 + $0x120] sm:$0xff] }
 0x16f   :  { %4253 = vmatprep.subr.mxu1 %v4956_v0  ;;  %4173 = vmatpush3.msra.mxu0 %v5495_v48 }
 0x170   :  { %4254 = vmatpush3.msra.mxu1 %v5353_v10  ;;  %4174 = vmatprep.subr.mxu0 %v4956_v0  ;;  %v6821_v10 = vand.u32 4294901760, %v5495_v48 }
 0x171   :  { %4255 = vmatprep.subr.mxu1 %v4956_v0  ;;  %4175 = vmatpush3.msra.mxu0 %v5507_v19 }
 0x172   :  { %4256 = vmatpush3.msra.mxu1 %v5355_v11  ;;  %4176 = vmatprep.subr.mxu0 %v4956_v0  ;;  %v6822_v11 = vand.u32 4294901760, %v5507_v19 }
 0x173   :  { %4257 = vmatprep.subr.mxu1 %v4956_v0  ;;  %4177 = vmatpush3.msra.mxu0 %v5512_v31 }
 0x174   :  { %4258 = vmatpush3.msra.mxu1 %v5357_v12  ;;  %4178 = vmatprep.subr.mxu0 %v4956_v0  ;;  %v6823_v12 = vand.u32 4294901760, %v5512_v31 }
 0x175   :  { %4259 = vmatprep.subr.mxu1 %v4956_v0  ;;  %4179 = vmatpush3.msra.mxu0 %v5515_v42 }
 0x176   :  { %4180 = vmatprep.mubr.msk.f32.mxu0 %vm4957_vm0, %v4956_v0  ;;  %4260 = vmatpush3.msra.mxu1 %v5388_v30 }
 0x177   :  { %4181 = vmatmul.mubr.f32.vlgmr.msra.gmra.mxu0 %v5552_v63  ;;  %4218 = vmatprep.subr.mxu0 %v4956_v0 }
 0x178   :  { %4261 = vmatprep.subr.mxu1 %v4956_v0  ;;  %4219 = vmatpush3.msra.mxu0 %v808_v18  ;;  %v5715_v18 = vand.u32 4294901760, %v1372_v16 }
 0x179   :  { %4262 = vmatpush3.msra.mxu1 %v5394_v40  ;;  %4220 = vmatprep.subr.mxu0 %v4956_v0 }
 0x17a   :  { %4263 = vmatprep.subr.mxu1 %v4956_v0  ;;  %4221 = vmatpush3.msra.mxu0 %v815_v20  ;;  %v5717_v20 = vand.u32 4294901760, %v1371_v17 }
 0x17b   :  { %4264 = vmatpush3.msra.mxu1 %v5402_v47  ;;  %4222 = vmatprep.subr.mxu0 %v4956_v0 }
 0x17c   :  { %4265 = vmatprep.subr.mxu1 %v4956_v0  ;;  %4223 = vmatpush3.msra.mxu0 %v822_v21  ;;  %v5720_v21 = vsub.f32 %v1372_v16, %v5715_v18  ;;  %v5723_v30 = vsub.f32 %v1371_v17, %v5717_v20 }
 0x17d   :  { %4266 = vmatpush3.msra.mxu1 %v5413_v59  ;;  %4224 = vmatprep.subr.mxu0 %v4956_v0  ;;  %v5739_v59 = vand.u32 4294901760, %v1370_v57 }
 0x17e   :  { %4267 = vmatprep.subr.mxu1 %v4956_v0  ;;  %4225 = vmatpush3.msra.mxu0 %v829_v45  ;;  %v1472_v35 = vand.u32 4294901760, %v5720_v21  ;;  %v1479_v40 = vand.u32 4294901760, %v5723_v30 }
 0x17f   :  { %4268 = vmatpush3.msra.mxu1 %v5425_v13  ;;  %4226 = vmatprep.subr.mxu0 %v4956_v0  ;;  %v5742_v8 = vsub.f32 %v1370_v57, %v5739_v59 }
 0x180   :  { %4269 = vmatprep.subr.mxu1 %v4956_v0  ;;  %4227 = vmatpush3.msra.mxu0 %v836_v55  ;;  %v1473_v45 = vsub.f32 %v5720_v21, %v1472_v35  ;;  %v1480_v46 = vsub.f32 %v5723_v30, %v1479_v40 }
 0x181   :  { %4270 = vmatpush3.msra.mxu1 %v5432_v37  ;;  %4228 = vmatprep.subr.mxu0 %v4956_v0  ;;  %v1486_v37 = vand.u32 4294901760, %v5742_v8 }
 0x182   :  { %4271 = vmatprep.subr.mxu1 %v4956_v0  ;;  %4229 = vmatpush3.msra.mxu0 %v843_v3  ;;  %v1474_v47 = vand.u32 4294901760, %v1473_v45  ;;  %v1481_v55 = vand.u32 4294901760, %v1480_v46  ;;  %v1369_v3 = vld [vmem:[#allocation2 + $0x160] sm:$0xff] }
 0x183   :  { %4272 = vmatpush3.msra.mxu1 %v5445_v54  ;;  %4230 = vmatprep.subr.mxu0 %v4956_v0  ;;  %v5744_v13 = vand.u32 4294901760, %v1369_v3  ;;  %v1367_v54 = vld [vmem:[#allocation2 + $0x150] sm:$0xff] }
 0x184   :  { %4273 = vmatprep.subr.mxu1 %v4956_v0  ;;  %4231 = vmatpush3.msra.mxu0 %v850_v32  ;;  %v1368_v32 = vld [vmem:[#allocation2 + $0x158] sm:$0xff] }
 0x185   :  { %4274 = vmatpush3.msra.mxu1 %v5455_v7  ;;  %4232 = vmatprep.subr.mxu0 %v4956_v0  ;;  %v5750_v38 = vsub.f32 %v1369_v3, %v5744_v13  ;;  %v5752_v52 = vand.u32 4294901760, %v1368_v32  ;;  %v5763_v7 = vand.u32 4294901760, %v1367_v54 }
 0x186   :  { %4275 = vmatprep.subr.mxu1 %v4956_v0  ;;  %4233 = vmatpush3.msra.mxu0 %v857_v56  ;;  %v1487_v56 = vsub.f32 %v5742_v8, %v1486_v37 }
 0x187   :  { %4276 = vmatpush3.msra.mxu1 %v5470_v41  ;;  %4234 = vmatprep.subr.mxu0 %v4956_v0  ;;  %v5761_v2 = vsub.f32 %v1368_v32, %v5752_v52  ;;  %v5772_v22 = vsub.f32 %v1367_v54, %v5763_v7 }
 0x188   :  { %4277 = vmatprep.subr.mxu1 %v4956_v0  ;;  %4235 = vmatpush3.msra.mxu0 %v864_v1  ;;  %v1493_v1 = vand.u32 4294901760, %v5750_v38  ;;  %v1488_v39 = vand.u32 4294901760, %v1487_v56  ;;  %v1358_v56 = vld [vmem:[#allocation2 + $0x108] sm:$0xff] }
 0x189   :  { %4278 = vmatpush3.msra.mxu1 %v5483_v23  ;;  %4236 = vmatprep.subr.mxu0 %v4956_v0 }
 0x18a   :  { %4279 = vmatprep.subr.mxu1 %v4956_v0  ;;  %4237 = vmatpush3.msra.mxu0 %v871_v36  ;;  %v1366_v36 = vld [vmem:[#allocation2 + $0x148] sm:$0xff]  ;;  %v1494_v41 = vsub.f32 %v5750_v38, %v1493_v1 }
 0x18b   :  { %4280 = vmatpush3.msra.mxu1 %v5491_v29  ;;  %4238 = vmatprep.subr.mxu0 %v4956_v0  ;;  %v5775_v23 = vand.u32 4294901760, %v1366_v36 }
 0x18c   :  { %4281 = vmatprep.subr.mxu1 %v4956_v0  ;;  %4239 = vmatpush3.msra.mxu0 %v878_v6  ;;  %v1500_v6 = vand.u32 4294901760, %v5761_v2  ;;  %v1495_v29 = vand.u32 4294901760, %v1494_v41  ;;  %v5859_v41 = vand.u32 4294901760, %v1358_v56 }
 0x18d   :  { %4282 = vmatpush3.msra.mxu1 %v5497_v53  ;;  %4240 = vmatprep.subr.mxu0 %v4956_v0  ;;  %v1507_v53 = vand.u32 4294901760, %v5772_v22  ;;  %v5786_v19 = vsub.f32 %v1366_v36, %v5775_v23  ;;  %v1357_v36 = vld [vmem:[#allocation2 + $0x100] sm:$0xff] }
 0x18e   :  { %4283 = vmatprep.subr.mxu1 %v4956_v0  ;;  %4241 = vmatpush3.msra.mxu0 %v885_v28  ;;  %v1365_v28 = vld [vmem:[#allocation2 + $0x140] sm:$0xff]  ;;  %v1501_v48 = vsub.f32 %v5761_v2, %v1500_v6 }
 0x18f   :  { %4284 = vmatpush3.msra.mxu1 %v5499_v61  ;;  %4285 = vmatprep.mubr.msk.f32.mxu1 %vm4957_vm0, %v4956_v0  ;;  %v5782_v61 = vand.u32 4294901760, %v1365_v28  ;;  %v1508_v42 = vsub.f32 %v5772_v22, %v1507_v53  ;;  %v1514_v62 = vand.u32 4294901760, %v5786_v19 }
 0x190   :  { %4242 = vmatprep.subr.mxu0 %v4956_v0  ;;  %4286 = vmatmul.mubr.f32.vlgmr.msra.gmra.mxu1 %v5548_v26  ;;  %v1502_v31 = vand.u32 4294901760, %v1501_v48 }
 0x191   :  { %4243 = vmatpush3.msra.mxu0 %v6821_v10  ;;  %4250 = vmatprep.mubr.msk.f32.mxu0 %vm4957_vm0, %v4956_v0  ;;  %v5793_v9 = vsub.f32 %v1365_v28, %v5782_v61  ;;  %v1509_v58 = vand.u32 4294901760, %v1508_v42  ;;  %v1515_v51 = vsub.f32 %v5786_v19, %v1514_v62  ;;  %v1535_v10 = vand.u32 4294901760, %v5818_v27 }
 0x192   :  { %4244 = vmatprep.subr.mxu0 %v4956_v0  ;;  %4323 = vmatprep.subr.mxu1 %v4956_v0  ;;  %v5861_v28 = vand.u32 4294901760, %v1357_v36  ;;  %v5874_v42 = vsub.f32 %v1358_v56, %v5859_v41 }
 0x193   :  { %4245 = vmatpush3.msra.mxu0 %v6822_v11  ;;  %4355 = vmatprep.mubr.msk.f32.mxu1 %vm4957_vm0, %v4956_v0  ;;  %v1521_v14 = vand.u32 4294901760, %v5793_v9  ;;  %v1516_v63 = vand.u32 4294901760, %v1515_v51  ;;  %v5830_v11 = vsub.f32 %v1362_v4, %v5820_v43  ;;  %v1536_v17 = vsub.f32 %v5818_v27, %v1535_v10 }
 0x194   :  { %4246 = vmatprep.subr.mxu0 %v4956_v0  ;;  %4324 = vmatpush3.msra.mxu1 %v1474_v47  ;;  %v5877_v44 = vsub.f32 %v1357_v36, %v5861_v28 }
 0x195   :  { %4247 = vmatpush3.msra.mxu0 %v6823_v12  ;;  %4325 = vmatprep.subr.mxu1 %v4956_v0  ;;  %v1522_v5 = vsub.f32 %v5793_v9, %v1521_v14  ;;  %v5833_v12 = vand.u32 4294901760, %v1361_v25  ;;  %v1542_v45 = vand.u32 4294901760, %v5830_v11  ;;  %v1537_v57 = vand.u32 4294901760, %v1536_v17 }
 0x196   :  { %4248 = vmatprep.subr.mxu0 %v4956_v0  ;;  %4326 = vmatpush3.msra.mxu1 %v1481_v55  ;;  %v1359_v55 = vld [vmem:[#allocation2 + $0x110] sm:$0xff] }
 0x197   :  { %4249 = vmatpush3.msra.mxu0 %v6824_v15  ;;  %4327 = vmatprep.subr.mxu1 %v4956_v0  ;;  %v1523_v49 = vand.u32 4294901760, %v1522_v5  ;;  %v1360_v15 = vld [vmem:[#allocation2 + $0x118] sm:$0xff]  ;;  %v5845_v47 = vsub.f32 %v1361_v25, %v5833_v12  ;;  %v1543_v3 = vsub.f32 %v5830_v11, %v1542_v45  ;;  %v5855_v54 = vand.u32 4294901760, %v1359_v55 }
 0x198   :  { %4251 = vmatmul.mubr.f32.vlgmr.msra.gmra.mxu0 %v5548_v26  ;;  %4288 = vmatprep.subr.mxu0 %v4956_v0  ;;  %v1364_v26 = vld [vmem:[#allocation2 + $0x138] sm:$0xff]  ;;  %v5841_v46 = vand.u32 4294901760, %v1360_v15  ;;  %v6810_v5 = vand.u32 4294901760, %v5874_v42 }
 0x199   :  { %4320 = vmatprep.mubr.msk.f32.mxu0 %vm4957_vm0, %v4956_v0  ;;  %4289 = vmatpush3.msra.mxu0 %v5715_v18  ;;  %v5795_v34 = vand.u32 4294901760, %v1364_v26 }
 0x19a   :  { %4290 = vmatprep.subr.mxu0 %v4956_v0  ;;  %4328 = vmatpush3.msra.mxu1 %v1488_v39  ;;  %v5853_v32 = vsub.f32 %v1360_v15, %v5841_v46  ;;  %v1549_v39 = vand.u32 4294901760, %v5845_v47 }
 0x19b   :  { %4291 = vmatpush3.msra.mxu0 %v5717_v20  ;;  %4329 = vmatprep.subr.mxu1 %v4956_v0  ;;  %v5803_v33 = vsub.f32 %v1364_v26, %v5795_v34  ;;  %v5867_v26 = vsub.f32 %v1359_v55, %v5855_v54 }
 0x19c   :  { %4292 = vmatprep.subr.mxu0 %v4956_v0  ;;  %4330 = vmatpush3.msra.mxu1 %v1495_v29  ;;  %v1544_v29 = vand.u32 4294901760, %v1543_v3  ;;  %v6812_v48 = vand.u32 4294901760, %v5853_v32 }
 0x19d   :  { %4293 = vmatpush3.msra.mxu0 %v5739_v59  ;;  %4331 = vmatprep.subr.mxu1 %v4956_v0  ;;  %v1528_v24 = vand.u32 4294901760, %v5803_v33  ;;  %v6811_v51 = vand.u32 4294901760, %v5867_v26 }
 0x19e   :  { %4294 = vmatprep.subr.mxu0 %v4956_v0  ;;  %4332 = vmatpush3.msra.mxu1 %v1502_v31  ;;  %v1550_v31 = vsub.f32 %v5845_v47, %v1549_v39 }
 0x19f   :  { %4295 = vmatpush3.msra.mxu0 %v5744_v13  ;;  %4333 = vmatprep.subr.mxu1 %v4956_v0  ;;  %v1529_v60 = vsub.f32 %v5803_v33, %v1528_v24 }
 0x1a0   :  { %4296 = vmatprep.subr.mxu0 %v4956_v0  ;;  %4334 = vmatpush3.msra.mxu1 %v1509_v58  ;;  %v1557_v58 = vsub.f32 %v5853_v32, %v6812_v48  ;;  %v1551_v4 = vand.u32 4294901760, %v1550_v31 }
 0x1a1   :  { %4297 = vmatpush3.msra.mxu0 %v5752_v52  ;;  %4335 = vmatprep.subr.mxu1 %v4956_v0  ;;  %v1530_v16 = vand.u32 4294901760, %v1529_v60  ;;  %v1571_v60 = vsub.f32 %v5874_v42, %v6810_v5 }
 0x1a2   :  { %4298 = vmatprep.subr.mxu0 %v4956_v0  ;;  %4336 = vmatpush3.msra.mxu1 %v1516_v63  ;;  %v6809_v63 = vand.u32 4294901760, %v5877_v44  ;;  %v1558_v25 = vand.u32 4294901760, %v1557_v58 }
 0x1a3   :  { %4299 = vmatpush3.msra.mxu0 %v5763_v7  ;;  %4337 = vmatprep.subr.mxu1 %v4956_v0  ;;  %v1572_v17 = vand.u32 4294901760, %v1571_v60 }
 0x1a4   :  { %4300 = vmatprep.subr.mxu0 %v4956_v0  ;;  %4338 = vmatpush3.msra.mxu1 %v1523_v49  ;;  %v1564_v49 = vsub.f32 %v5867_v26, %v6811_v51  ;;  %v1578_v15 = vsub.f32 %v5877_v44, %v6809_v63 }
 0x1a5   :  { %4301 = vmatpush3.msra.mxu0 %v5775_v23  ;;  %4339 = vmatprep.subr.mxu1 %v4956_v0 }
 0x1a6   :  { %4302 = vmatprep.subr.mxu0 %v4956_v0  ;;  %4340 = vmatpush3.msra.mxu1 %v1530_v16  ;;  %v1565_v16 = vand.u32 4294901760, %v1564_v49  ;;  %v1579_v55 = vand.u32 4294901760, %v1578_v15 }
 0x1a7   :  { %4303 = vmatpush3.msra.mxu0 %v5782_v61  ;;  %4341 = vmatprep.subr.mxu1 %v4956_v0 }
 0x1a8   :  { %4304 = vmatprep.subr.mxu0 %v4956_v0  ;;  %4342 = vmatpush3.msra.mxu1 %v1537_v57 }
 0x1a9   :  { %4305 = vmatpush3.msra.mxu0 %v5795_v34  ;;  %4343 = vmatprep.subr.mxu1 %v4956_v0 }
 0x1aa   :  { %4306 = vmatprep.subr.mxu0 %v4956_v0  ;;  %4344 = vmatpush3.msra.mxu1 %v1544_v29 }
 0x1ab   :  { %4307 = vmatpush3.msra.mxu0 %v5805_v50  ;;  %4345 = vmatprep.subr.mxu1 %v4956_v0 }
 0x1ac   :  { %4308 = vmatprep.subr.mxu0 %v4956_v0  ;;  %4346 = vmatpush3.msra.mxu1 %v1551_v4 }
 0x1ad   :  { %4309 = vmatpush3.msra.mxu0 %v5820_v43  ;;  %4347 = vmatprep.subr.mxu1 %v4956_v0 }
 0x1ae   :  { %4310 = vmatprep.subr.mxu0 %v4956_v0  ;;  %4348 = vmatpush3.msra.mxu1 %v1558_v25  ;;  %v3354_v25 = vld [vmem:[%s6803_s2 + $0x1] ss:$0 sm:$0xff] }
 0x1af   :  { %4311 = vmatpush3.msra.mxu0 %v5833_v12  ;;  %4349 = vmatprep.subr.mxu1 %v4956_v0 }
 0x1b0   :  { %4312 = vmatprep.subr.mxu0 %v4956_v0  ;;  %4350 = vmatpush3.msra.mxu1 %v1565_v16 }
 0x1b1   :  { %4313 = vmatpush3.msra.mxu0 %v5841_v46  ;;  %4351 = vmatprep.subr.mxu1 %v4956_v0 }
 0x1b2   :  { %4314 = vmatprep.subr.mxu0 %v4956_v0  ;;  %4352 = vmatpush3.msra.mxu1 %v1572_v17 }
 0x1b3   :  { %4315 = vmatpush3.msra.mxu0 %v5855_v54  ;;  %4353 = vmatprep.subr.mxu1 %v4956_v0 }
 0x1b4   :  { %4316 = vmatprep.subr.mxu0 %v4956_v0  ;;  %4354 = vmatpush3.msra.mxu1 %v1579_v55 }
 0x1b5   :  { %4317 = vmatpush3.msra.mxu0 %v5859_v41  ;;  %4393 = vmatprep.subr.mxu1 %v4956_v0 }
 0x1b6   :  { %4318 = vmatprep.subr.mxu0 %v4956_v0 }
 0x1b7   :  { %4319 = vmatpush3.msra.mxu0 %v5861_v28 }
 0x1b8   :  { %4358 = vmatprep.subr.mxu0 %v4956_v0 }
 0x20e   :  { %v952_v57 = vpop.f32.mrf.mxu1 }
 0x210   :  { %v4147_v3 = vpop.f32.mrf.mxu1 }
 0x216   :  { %v801_v56 = vpop.f32.mrf.mxu0 }
 0x217   :  { %v802_v49 = vadd.f32 %v3354_v25, %v801_v56 }
 0x218   :  { %v4112_v36 = vpop.f32.mrf.mxu0 }
 0x219   :  { %v953_v15 = vadd.f32 %v952_v57, %v802_v49 }
 0x22e   :  { %v1145_v29 = vpop.f32.mrf.mxu1 }
 0x230   :  { %v4217_v31 = vpop.f32.mrf.mxu1 }
 0x237   :  { %v1056_v58 = vpop.f32.mrf.mxu0 }
 0x238   :  { %v1057_v17 = vadd.f32 %v1056_v58, %v953_v15  ;;  %v2027_v58 = vld [vmem:[#allocation2 + $0x1b0] sm:$0xff] }
 0x239   :  { %v4182_v4 = vpop.f32.mrf.mxu0 }
 0x23a   :  { %v1146_v55 = vadd.f32 %v1145_v29, %v1057_v17 }
 0x250   :  { %v1351_v60 = vpop.f32.mrf.mxu1 }
 0x252   :  { %v4287_v16 = vpop.f32.mrf.mxu1 }
 0x253   :  { %v2026_v16 = vld [vmem:[#allocation2 + $0x1a8] sm:$0xff] }
 0x258   :  { %v1264_v63 = vpop.f32.mrf.mxu0 }
 0x259   :  { %v1265_v5 = vadd.f32 %v1264_v63, %v1146_v55 }
 0x25a   :  { %v4252_v51 = vpop.f32.mrf.mxu0 }
 0x25b   :  { %v1352_v3 = vadd.f32 %v1351_v60, %v1265_v5  ;;  %v6167_v60 = vand.u32 4294901760, %v2027_v58 }
 0x25d   :  { %4925 = vtanh.f32 %v1352_v3  ;;  %v6180_v3 = vsub.f32 %v2027_v58, %v6167_v60 }
 0x26a   :  { %v4926_v36 = vpop.eup %4925 }
 0x26b   :  { %v5910_v48 = vand.u32 4294901760, %v4926_v36 }
 0x26d   :  { %4356 = vmatmul.mubr.f32.vlgmr.msra.gmra.mxu1 %v5910_v48  ;;  %v5914_v31 = vsub.f32 %v4926_v36, %v5910_v48  ;;  %v6182_v36 = vand.u32 4294901760, %v2026_v16 }
 0x26e   :  { %4394 = vmatpush3.msra.mxu1 %v5715_v18  ;;  %4425 = vmatprep.mubr.msk.f32.mxu1 %vm4957_vm0, %v4956_v0 }
 0x26f   :  { %4395 = vmatprep.subr.mxu1 %v4956_v0  ;;  %v1461_v63 = vand.u32 4294901760, %v5914_v31 }
 0x270   :  { %4396 = vmatpush3.msra.mxu1 %v5717_v20 }
 0x271   :  { %4397 = vmatprep.subr.mxu1 %v4956_v0  ;;  %v1462_v51 = vsub.f32 %v5914_v31, %v1461_v63 }
 0x272   :  { %4398 = vmatpush3.msra.mxu1 %v5739_v59 }
 0x273   :  { %4399 = vmatprep.subr.mxu1 %v4956_v0  ;;  %v1463_v5 = vand.u32 4294901760, %v1462_v51 }
 0x274   :  { %4400 = vmatpush3.msra.mxu1 %v5744_v13 }
 0x275   :  { %4401 = vmatprep.subr.mxu1 %v4956_v0  ;;  %4321 = vmatmul.mubr.f32.vlgmr.msra.gmra.mxu0 %v1463_v5 }
 0x276   :  { %4359 = vmatpush3.msra.mxu0 %v5720_v21  ;;  %4402 = vmatpush3.msra.mxu1 %v5752_v52  ;;  %v6827_v21 = vand.u32 4294901760, %v5874_v42 }
 0x277   :  { %4360 = vmatprep.subr.mxu0 %v4956_v0  ;;  %4403 = vmatprep.subr.mxu1 %v4956_v0 }
 0x278   :  { %4361 = vmatpush3.msra.mxu0 %v5723_v30  ;;  %4404 = vmatpush3.msra.mxu1 %v5763_v7  ;;  %v6828_v30 = vand.u32 4294901760, %v5877_v44 }
 0x279   :  { %4362 = vmatprep.subr.mxu0 %v4956_v0  ;;  %4405 = vmatprep.subr.mxu1 %v4956_v0 }
 0x27a   :  { %4363 = vmatpush3.msra.mxu0 %v5742_v8  ;;  %4406 = vmatpush3.msra.mxu1 %v5775_v23 }
 0x27b   :  { %4364 = vmatprep.subr.mxu0 %v4956_v0  ;;  %4407 = vmatprep.subr.mxu1 %v4956_v0 }
 0x27c   :  { %4365 = vmatpush3.msra.mxu0 %v5750_v38  ;;  %4408 = vmatpush3.msra.mxu1 %v5782_v61 }
 0x27d   :  { %4366 = vmatprep.subr.mxu0 %v4956_v0  ;;  %4409 = vmatprep.subr.mxu1 %v4956_v0 }
 0x27e   :  { %4367 = vmatpush3.msra.mxu0 %v5761_v2  ;;  %4410 = vmatpush3.msra.mxu1 %v5795_v34 }
 0x27f   :  { %4368 = vmatprep.subr.mxu0 %v4956_v0  ;;  %4411 = vmatprep.subr.mxu1 %v4956_v0 }
 0x280   :  { %4369 = vmatpush3.msra.mxu0 %v5772_v22  ;;  %4412 = vmatpush3.msra.mxu1 %v5805_v50  ;;  %v2034_v22 = vld [vmem:[#allocation2 + $0x1e8] sm:$0xff] }
 0x281   :  { %4370 = vmatprep.subr.mxu0 %v4956_v0  ;;  %4413 = vmatprep.subr.mxu1 %v4956_v0 }
 0x282   :  { %4371 = vmatpush3.msra.mxu0 %v5786_v19  ;;  %4414 = vmatpush3.msra.mxu1 %v5820_v43 }
 0x283   :  { %4372 = vmatprep.subr.mxu0 %v4956_v0  ;;  %4415 = vmatprep.subr.mxu1 %v4956_v0 }
 0x284   :  { %4373 = vmatpush3.msra.mxu0 %v5793_v9  ;;  %4416 = vmatpush3.msra.mxu1 %v5833_v12  ;;  %v2032_v9 = vld [vmem:[#allocation2 + $0x1d8] sm:$0xff] }
 0x285   :  { %4374 = vmatprep.subr.mxu0 %v4956_v0  ;;  %4417 = vmatprep.subr.mxu1 %v4956_v0 }
 0x286   :  { %4375 = vmatpush3.msra.mxu0 %v5803_v33  ;;  %4418 = vmatpush3.msra.mxu1 %v5841_v46  ;;  %v2031_v33 = vld [vmem:[#allocation2 + $0x1d0] sm:$0xff] }
 0x287   :  { %4376 = vmatprep.subr.mxu0 %v4956_v0  ;;  %4419 = vmatprep.subr.mxu1 %v4956_v0 }
 0x288   :  { %4377 = vmatpush3.msra.mxu0 %v5818_v27  ;;  %4420 = vmatpush3.msra.mxu1 %v5855_v54 }
 0x289   :  { %4378 = vmatprep.subr.mxu0 %v4956_v0  ;;  %4421 = vmatprep.subr.mxu1 %v4956_v0 }
 0x28a   :  { %4379 = vmatpush3.msra.mxu0 %v5830_v11  ;;  %4422 = vmatpush3.msra.mxu1 %v5859_v41 }
 0x28b   :  { %4380 = vmatprep.subr.mxu0 %v4956_v0  ;;  %4423 = vmatprep.subr.mxu1 %v4956_v0 }
 0x28c   :  { %4381 = vmatpush3.msra.mxu0 %v5845_v47  ;;  %4424 = vmatpush3.msra.mxu1 %v5861_v28 }
 0x28d   :  { %4382 = vmatprep.subr.mxu0 %v4956_v0  ;;  %4426 = vmatmul.mubr.f32.vlgmr.msra.gmra.mxu1 %v1461_v63  ;;  %v2025_v63 = vld [vmem:[#allocation2 + $0x1a0] sm:$0xff] }
 0x28e   :  { %4463 = vmatprep.subr.mxu1 %v4956_v0  ;;  %4383 = vmatpush3.msra.mxu0 %v5853_v32 }
 0x28f   :  { %4464 = vmatpush3.msra.mxu1 %v5715_v18  ;;  %4384 = vmatprep.subr.mxu0 %v4956_v0  ;;  %v6825_v18 = vand.u32 4294901760, %v5853_v32  ;;  %v2029_v32 = vld [vmem:[#allocation2 + $0x1c0] sm:$0xff] }
 0x290   :  { %4465 = vmatprep.subr.mxu1 %v4956_v0  ;;  %4385 = vmatpush3.msra.mxu0 %v5867_v26 }
 0x291   :  { %4466 = vmatpush3.msra.mxu1 %v5717_v20  ;;  %4386 = vmatprep.subr.mxu0 %v4956_v0  ;;  %v6826_v20 = vand.u32 4294901760, %v5867_v26  ;;  %v2028_v26 = vld [vmem:[#allocation2 + $0x1b8] sm:$0xff] }
 0x292   :  { %4467 = vmatprep.subr.mxu1 %v4956_v0  ;;  %4387 = vmatpush3.msra.mxu0 %v5874_v42  ;;  %v6157_v56 = vand.u32 4294901760, %v2028_v26 }
 0x293   :  { %4468 = vmatpush3.msra.mxu1 %v5739_v59  ;;  %4388 = vmatprep.subr.mxu0 %v4956_v0 }
 0x294   :  { %4469 = vmatprep.subr.mxu1 %v4956_v0  ;;  %4389 = vmatpush3.msra.mxu0 %v5877_v44  ;;  %v6165_v49 = vsub.f32 %v2028_v26, %v6157_v56 }
 0x295   :  { %4390 = vmatprep.mubr.msk.f32.mxu0 %vm4957_vm0, %v4956_v0  ;;  %4470 = vmatpush3.msra.mxu1 %v5744_v13 }
 0x296   :  { %4391 = vmatmul.mubr.f32.vlgmr.msra.gmra.mxu0 %v5914_v31  ;;  %4428 = vmatprep.subr.mxu0 %v4956_v0  ;;  %v2192_v55 = vand.u32 4294901760, %v6165_v49 }
 0x297   :  { %4471 = vmatprep.subr.mxu1 %v4956_v0  ;;  %4429 = vmatpush3.msra.mxu0 %v1472_v35  ;;  %v2036_v35 = vld [vmem:[#allocation2 + $0x1f8] sm:$0xff] }
 0x298   :  { %4472 = vmatpush3.msra.mxu1 %v5752_v52  ;;  %4430 = vmatprep.subr.mxu0 %v4956_v0  ;;  %v6077_v59 = vand.u32 4294901760, %v2036_v35  ;;  %v2193_v5 = vsub.f32 %v6165_v49, %v2192_v55 }
 0x299   :  { %4473 = vmatprep.subr.mxu1 %v4956_v0  ;;  %4431 = vmatpush3.msra.mxu0 %v1479_v40  ;;  %v2035_v40 = vld [vmem:[#allocation2 + $0x1f0] sm:$0xff] }
 0x29a   :  { %4474 = vmatpush3.msra.mxu1 %v5763_v7  ;;  %4432 = vmatprep.subr.mxu0 %v4956_v0  ;;  %v6079_v8 = vand.u32 4294901760, %v2035_v40  ;;  %v6082_v13 = vsub.f32 %v2036_v35, %v6077_v59  ;;  %v2194_v35 = vand.u32 4294901760, %v2193_v5 }
 0x29b   :  { %4475 = vmatprep.subr.mxu1 %v4956_v0  ;;  %4433 = vmatpush3.msra.mxu0 %v1486_v37 }
 0x29c   :  { %4476 = vmatpush3.msra.mxu1 %v5775_v23  ;;  %4434 = vmatprep.subr.mxu0 %v4956_v0  ;;  %v6085_v37 = vsub.f32 %v2035_v40, %v6079_v8  ;;  %v2136_v38 = vand.u32 4294901760, %v6082_v13  ;;  %v6101_v23 = vand.u32 4294901760, %v2034_v22 }
 0x29d   :  { %4477 = vmatprep.subr.mxu1 %v4956_v0  ;;  %4435 = vmatpush3.msra.mxu0 %v1493_v1 }
 0x29e   :  { %4478 = vmatpush3.msra.mxu1 %v5782_v61  ;;  %4436 = vmatprep.subr.mxu0 %v4956_v0  ;;  %v2143_v52 = vand.u32 4294901760, %v6085_v37  ;;  %v2137_v1 = vsub.f32 %v6082_v13, %v2136_v38  ;;  %v6104_v61 = vsub.f32 %v2034_v22, %v6101_v23 }
 0x29f   :  { %4479 = vmatprep.subr.mxu1 %v4956_v0  ;;  %4437 = vmatpush3.msra.mxu0 %v1500_v6 }
 0x2a0   :  { %4480 = vmatpush3.msra.mxu1 %v5795_v34  ;;  %4438 = vmatprep.subr.mxu0 %v4956_v0  ;;  %v2144_v2 = vsub.f32 %v6085_v37, %v2143_v52  ;;  %v2138_v7 = vand.u32 4294901760, %v2137_v1  ;;  %v2150_v34 = vand.u32 4294901760, %v6104_v61 }
 0x2a1   :  { %4481 = vmatprep.subr.mxu1 %v4956_v0  ;;  %4439 = vmatpush3.msra.mxu0 %v1507_v53  ;;  %v2033_v53 = vld [vmem:[#allocation2 + $0x1e0] sm:$0xff] }
 0x2a2   :  { %4482 = vmatpush3.msra.mxu1 %v5805_v50  ;;  %4440 = vmatprep.subr.mxu0 %v4956_v0  ;;  %v2145_v6 = vand.u32 4294901760, %v2144_v2  ;;  %v6106_v19 = vand.u32 4294901760, %v2033_v53  ;;  %v2151_v50 = vsub.f32 %v6104_v61, %v2150_v34 }
 0x2a3   :  { %4483 = vmatprep.subr.mxu1 %v4956_v0  ;;  %4441 = vmatpush3.msra.mxu0 %v1514_v62 }
 0x2a4   :  { %4484 = vmatpush3.msra.mxu1 %v5820_v43  ;;  %4442 = vmatprep.subr.mxu0 %v4956_v0  ;;  %v6112_v62 = vsub.f32 %v2033_v53, %v6106_v19  ;;  %v6125_v43 = vand.u32 4294901760, %v2031_v33  ;;  %v2152_v11 = vand.u32 4294901760, %v2151_v50  ;;  %v2022_v50 = vld [vmem:[#allocation2 + $0x188] sm:$0xff] }
 0x2a5   :  { %4485 = vmatprep.subr.mxu1 %v4956_v0  ;;  %4443 = vmatpush3.msra.mxu0 %v1521_v14  ;;  %v6114_v14 = vand.u32 4294901760, %v2032_v9 }
 0x2a6   :  { %4486 = vmatpush3.msra.mxu1 %v5833_v12  ;;  %4444 = vmatprep.subr.mxu0 %v4956_v0 }
 0x2a7   :  { %4487 = vmatprep.subr.mxu1 %v4956_v0  ;;  %4445 = vmatpush3.msra.mxu0 %v1528_v24  ;;  %v2157_v24 = vand.u32 4294901760, %v6112_v62  ;;  %v6123_v27 = vsub.f32 %v2032_v9, %v6114_v14 }
 0x2a8   :  { %4488 = vmatpush3.msra.mxu1 %v5841_v46  ;;  %4446 = vmatprep.subr.mxu0 %v4956_v0  ;;  %v6134_v46 = vsub.f32 %v2031_v33, %v6125_v43 }
 0x2a9   :  { %4489 = vmatprep.subr.mxu1 %v4956_v0  ;;  %4447 = vmatpush3.msra.mxu0 %v1535_v10  ;;  %v2030_v10 = vld [vmem:[#allocation2 + $0x1c8] sm:$0xff]  ;;  %v2158_v12 = vsub.f32 %v6112_v62, %v2157_v24 }
 0x2aa   :  { %4490 = vmatpush3.msra.mxu1 %v5855_v54  ;;  %4448 = vmatprep.subr.mxu0 %v4956_v0  ;;  %v6137_v47 = vand.u32 4294901760, %v2030_v10 }
 0x2ab   :  { %4491 = vmatprep.subr.mxu1 %v4956_v0  ;;  %4449 = vmatpush3.msra.mxu0 %v1542_v45  ;;  %v2164_v45 = vand.u32 4294901760, %v6123_v27  ;;  %v2159_v54 = vand.u32 4294901760, %v2158_v12  ;;  %v6221_v12 = vand.u32 4294901760, %v2022_v50 }
 0x2ac   :  { %4492 = vmatpush3.msra.mxu1 %v5859_v41  ;;  %4450 = vmatprep.subr.mxu0 %v4956_v0  ;;  %v2171_v41 = vand.u32 4294901760, %v6134_v46 }
 0x2ad   :  { %4493 = vmatprep.subr.mxu1 %v4956_v0  ;;  %4451 = vmatpush3.msra.mxu0 %v1549_v39  ;;  %v2165_v39 = vsub.f32 %v6123_v27, %v2164_v45 }
 0x2ae   :  { %4494 = vmatpush3.msra.mxu1 %v5861_v28  ;;  %4495 = vmatprep.mubr.msk.f32.mxu1 %vm4957_vm0, %v4956_v0  ;;  %v6144_v28 = vand.u32 4294901760, %v2029_v32  ;;  %v2172_v44 = vsub.f32 %v6134_v46, %v2171_v41 }
 0x2af   :  { %4452 = vmatprep.subr.mxu0 %v4956_v0  ;;  %4496 = vmatmul.mubr.f32.vlgmr.msra.gmra.mxu1 %v5910_v48  ;;  %v2166_v42 = vand.u32 4294901760, %v2165_v39 }
 0x2b0   :  { %4453 = vmatpush3.msra.mxu0 %v6825_v18  ;;  %4460 = vmatprep.mubr.msk.f32.mxu0 %vm4957_vm0, %v4956_v0  ;;  %v6155_v57 = vsub.f32 %v2029_v32, %v6144_v28  ;;  %v2173_v4 = vand.u32 4294901760, %v2172_v44  ;;  %v2199_v18 = vand.u32 4294901760, %v6180_v3  ;;  %v6236_v44 = vsub.f32 %v2022_v50, %v6221_v12 }
 0x2b1   :  { %4454 = vmatprep.subr.mxu0 %v4956_v0  ;;  %4533 = vmatprep.subr.mxu1 %v4956_v0 }
 0x2b2   :  { %4455 = vmatpush3.msra.mxu0 %v6826_v20  ;;  %4565 = vmatprep.mubr.msk.f32.mxu1 %vm4957_vm0, %v4956_v0  ;;  %v2185_v25 = vand.u32 4294901760, %v6155_v57  ;;  %v6192_v20 = vsub.f32 %v2026_v16, %v6182_v36  ;;  %v2200_v40 = vsub.f32 %v6180_v3, %v2199_v18 }
 0x2b3   :  { %4456 = vmatprep.subr.mxu0 %v4956_v0  ;;  %4534 = vmatpush3.msra.mxu1 %v2138_v7 }
 0x2b4   :  { %4457 = vmatpush3.msra.mxu0 %v6827_v21  ;;  %4535 = vmatprep.subr.mxu1 %v4956_v0  ;;  %v2186_v17 = vsub.f32 %v6155_v57, %v2185_v25  ;;  %v6195_v21 = vand.u32 4294901760, %v2025_v63  ;;  %v2206_v1 = vand.u32 4294901760, %v6192_v20  ;;  %v2201_v22 = vand.u32 4294901760, %v2200_v40 }
 0x2b5   :  { %4458 = vmatprep.subr.mxu0 %v4956_v0  ;;  %4536 = vmatpush3.msra.mxu1 %v2145_v6  ;;  %v2023_v6 = vld [vmem:[#allocation2 + $0x190] sm:$0xff] }
 0x2b6   :  { %4459 = vmatpush3.msra.mxu0 %v6828_v30  ;;  %4537 = vmatprep.subr.mxu1 %v4956_v0  ;;  %v2187_v51 = vand.u32 4294901760, %v2186_v17  ;;  %v2024_v30 = vld [vmem:[#allocation2 + $0x198] sm:$0xff]  ;;  %v6207_v7 = vsub.f32 %v2025_v63, %v6195_v21  ;;  %v2207_v53 = vsub.f32 %v6192_v20, %v2206_v1  ;;  %v6217_v33 = vand.u32 4294901760, %v2023_v6 }
 0x2b7   :  { %4461 = vmatmul.mubr.f32.vlgmr.msra.gmra.mxu0 %v5910_v48  ;;  %4498 = vmatprep.subr.mxu0 %v4956_v0  ;;  %v6148_v48 = vsub.f32 %v2030_v10, %v6137_v47  ;;  %v6203_v2 = vand.u32 4294901760, %v2024_v30  ;;  %v2021_v10 = vld [vmem:[#allocation2 + $0x180] sm:$0xff]  ;;  %v6814_v17 = vand.u32 4294901760, %v6236_v44 }
 0x2b8   :  { %4530 = vmatprep.mubr.msk.f32.mxu0 %vm4957_vm0, %v4956_v0  ;;  %4499 = vmatpush3.msra.mxu0 %v6077_v59  ;;  %v6223_v32 = vand.u32 4294901760, %v2021_v10  ;;  %v6229_v26 = vsub.f32 %v2023_v6, %v6217_v33 }
 0x2b9   :  { %4500 = vmatprep.subr.mxu0 %v4956_v0  ;;  %4538 = vmatpush3.msra.mxu1 %v2152_v11  ;;  %v2178_v29 = vand.u32 4294901760, %v6148_v48  ;;  %v6215_v9 = vsub.f32 %v2024_v30, %v6203_v2  ;;  %v2213_v11 = vand.u32 4294901760, %v6207_v7  ;;  %v2235_v5 = vsub.f32 %v6236_v44, %v6814_v17 }
 0x2ba   :  { %4501 = vmatpush3.msra.mxu0 %v6079_v8  ;;  %4539 = vmatprep.subr.mxu1 %v4956_v0  ;;  %v6239_v58 = vsub.f32 %v2021_v10, %v6223_v32 }
 0x2bb   :  { %4502 = vmatprep.subr.mxu0 %v4956_v0  ;;  %4540 = vmatpush3.msra.mxu1 %v2159_v54  ;;  %v2179_v15 = vsub.f32 %v6148_v48, %v2178_v29  ;;  %v2208_v54 = vand.u32 4294901760, %v2207_v53  ;;  %v6816_v39 = vand.u32 4294901760, %v6215_v9  ;;  %v2236_v40 = vand.u32 4294901760, %v2235_v5 }
 0x2bc   :  { %4503 = vmatpush3.msra.mxu0 %v6101_v23  ;;  %4541 = vmatprep.subr.mxu1 %v4956_v0 }
 0x2bd   :  { %4504 = vmatprep.subr.mxu0 %v4956_v0  ;;  %4542 = vmatpush3.msra.mxu1 %v2166_v42  ;;  %v2180_v31 = vand.u32 4294901760, %v2179_v15  ;;  %v2214_v42 = vsub.f32 %v6207_v7, %v2213_v11  ;;  %v6815_v15 = vand.u32 4294901760, %v6229_v26 }
 0x2be   :  { %4505 = vmatpush3.msra.mxu0 %v6106_v19  ;;  %4543 = vmatprep.subr.mxu1 %v4956_v0 }
 0x2bf   :  { %4506 = vmatprep.subr.mxu0 %v4956_v0  ;;  %4544 = vmatpush3.msra.mxu1 %v2173_v4  ;;  %v2221_v4 = vsub.f32 %v6215_v9, %v6816_v39  ;;  %v2215_v16 = vand.u32 4294901760, %v2214_v42 }
 0x2c0   :  { %4507 = vmatpush3.msra.mxu0 %v6114_v14  ;;  %4545 = vmatprep.subr.mxu1 %v4956_v0 }
 0x2c1   :  { %4508 = vmatprep.subr.mxu0 %v4956_v0  ;;  %4546 = vmatpush3.msra.mxu1 %v2180_v31  ;;  %v6813_v31 = vand.u32 4294901760, %v6239_v58  ;;  %v2222_v63 = vand.u32 4294901760, %v2221_v4 }
 0x2c2   :  { %4509 = vmatpush3.msra.mxu0 %v6125_v43  ;;  %4547 = vmatprep.subr.mxu1 %v4956_v0 }
 0x2c3   :  { %4510 = vmatprep.subr.mxu0 %v4956_v0  ;;  %4548 = vmatpush3.msra.mxu1 %v2187_v51  ;;  %v2228_v51 = vsub.f32 %v6229_v26, %v6815_v15  ;;  %v2242_v30 = vsub.f32 %v6239_v58, %v6813_v31 }
 0x2c4   :  { %4511 = vmatpush3.msra.mxu0 %v6137_v47  ;;  %4549 = vmatprep.subr.mxu1 %v4956_v0 }
 0x2c5   :  { %4512 = vmatprep.subr.mxu0 %v4956_v0  ;;  %4550 = vmatpush3.msra.mxu1 %v2194_v35  ;;  %v2229_v35 = vand.u32 4294901760, %v2228_v51  ;;  %v2243_v6 = vand.u32 4294901760, %v2242_v30 }
 0x2c6   :  { %4513 = vmatpush3.msra.mxu0 %v6144_v28  ;;  %4551 = vmatprep.subr.mxu1 %v4956_v0 }
 0x2c7   :  { %4514 = vmatprep.subr.mxu0 %v4956_v0  ;;  %4552 = vmatpush3.msra.mxu1 %v2201_v22 }
 0x2c8   :  { %4515 = vmatpush3.msra.mxu0 %v6157_v56  ;;  %4553 = vmatprep.subr.mxu1 %v4956_v0 }
 0x2c9   :  { %4516 = vmatprep.subr.mxu0 %v4956_v0  ;;  %4554 = vmatpush3.msra.mxu1 %v2208_v54 }
 0x2ca   :  { %4517 = vmatpush3.msra.mxu0 %v6167_v60  ;;  %4555 = vmatprep.subr.mxu1 %v4956_v0 }
 0x2cb   :  { %4518 = vmatprep.subr.mxu0 %v4956_v0  ;;  %4556 = vmatpush3.msra.mxu1 %v2215_v16 }
 0x2cc   :  { %4519 = vmatpush3.msra.mxu0 %v6182_v36  ;;  %4557 = vmatprep.subr.mxu1 %v4956_v0 }
 0x2cd   :  { %4520 = vmatprep.subr.mxu0 %v4956_v0  ;;  %4558 = vmatpush3.msra.mxu1 %v2222_v63  ;;  %v3355_v63 = vld [vmem:[%s6803_s2 + $0x2] ss:$0 sm:$0xff] }
 0x2ce   :  { %4521 = vmatpush3.msra.mxu0 %v6195_v21  ;;  %4559 = vmatprep.subr.mxu1 %v4956_v0 }
 0x2cf   :  { %4522 = vmatprep.subr.mxu0 %v4956_v0  ;;  %4560 = vmatpush3.msra.mxu1 %v2229_v35 }
 0x2d0   :  { %4523 = vmatpush3.msra.mxu0 %v6203_v2  ;;  %4561 = vmatprep.subr.mxu1 %v4956_v0 }
 0x2d1   :  { %4524 = vmatprep.subr.mxu0 %v4956_v0  ;;  %4562 = vmatpush3.msra.mxu1 %v2236_v40 }
 0x2d2   :  { %4525 = vmatpush3.msra.mxu0 %v6217_v33  ;;  %4563 = vmatprep.subr.mxu1 %v4956_v0 }
 0x2d3   :  { %4526 = vmatprep.subr.mxu0 %v4956_v0  ;;  %4564 = vmatpush3.msra.mxu1 %v2243_v6 }
 0x2d4   :  { %4527 = vmatpush3.msra.mxu0 %v6221_v12  ;;  %4603 = vmatprep.subr.mxu1 %v4956_v0 }
 0x2d5   :  { %4528 = vmatprep.subr.mxu0 %v4956_v0 }
 0x2d6   :  { %4529 = vmatpush3.msra.mxu0 %v6223_v32 }
 0x2d7   :  { %4568 = vmatprep.subr.mxu0 %v4956_v0 }
 0x32d   :  { %v1616_v22 = vpop.f32.mrf.mxu1 }
 0x32f   :  { %v4357_v53 = vpop.f32.mrf.mxu1 }
 0x335   :  { %v1465_v50 = vpop.f32.mrf.mxu0 }
 0x336   :  { %v1466_v51 = vadd.f32 %v3355_v63, %v1465_v50 }
 0x337   :  { %v4322_v10 = vpop.f32.mrf.mxu0 }
 0x338   :  { %v1617_v30 = vadd.f32 %v1616_v22, %v1466_v51 }
 0x34d   :  { %v1809_v54 = vpop.f32.mrf.mxu1 }
 0x34f   :  { %v4427_v42 = vpop.f32.mrf.mxu1 }
 0x356   :  { %v1720_v4 = vpop.f32.mrf.mxu0 }
 0x357   :  { %v1721_v40 = vadd.f32 %v1720_v4, %v1617_v30  ;;  %v2691_v4 = vld [vmem:[#allocation2 + $0x230] sm:$0xff] }
 0x358   :  { %v4392_v16 = vpop.f32.mrf.mxu0 }
 0x359   :  { %v1810_v6 = vadd.f32 %v1809_v54, %v1721_v40 }
 0x36f   :  { %v2015_v5 = vpop.f32.mrf.mxu1 }
 0x371   :  { %v4497_v35 = vpop.f32.mrf.mxu1 }
 0x372   :  { %v2690_v35 = vld [vmem:[#allocation2 + $0x228] sm:$0xff] }
 0x377   :  { %v1928_v31 = vpop.f32.mrf.mxu0 }
 0x378   :  { %v1929_v17 = vadd.f32 %v1928_v31, %v1810_v6 }
 0x379   :  { %v4462_v15 = vpop.f32.mrf.mxu0 }
 0x37a   :  { %v2016_v53 = vadd.f32 %v2015_v5, %v1929_v17  ;;  %v6529_v5 = vand.u32 4294901760, %v2691_v4 }
 0x37c   :  { %4927 = vtanh.f32 %v2016_v53  ;;  %v6542_v53 = vsub.f32 %v2691_v4, %v6529_v5 }
 0x389   :  { %v4928_v10 = vpop.eup %4927 }
 0x38a   :  { %v6272_v39 = vand.u32 4294901760, %v4928_v10 }
 0x38c   :  { %4566 = vmatmul.mubr.f32.vlgmr.msra.gmra.mxu1 %v6272_v39  ;;  %v6276_v42 = vsub.f32 %v4928_v10, %v6272_v39  ;;  %v6544_v10 = vand.u32 4294901760, %v2690_v35 }
 0x38d   :  { %4604 = vmatpush3.msra.mxu1 %v6077_v59  ;;  %4635 = vmatprep.mubr.msk.f32.mxu1 %vm4957_vm0, %v4956_v0 }
 0x38e   :  { %4605 = vmatprep.subr.mxu1 %v4956_v0  ;;  %v2125_v31 = vand.u32 4294901760, %v6276_v42 }
 0x38f   :  { %4606 = vmatpush3.msra.mxu1 %v6079_v8 }
 0x390   :  { %4607 = vmatprep.subr.mxu1 %v4956_v0  ;;  %v2126_v15 = vsub.f32 %v6276_v42, %v2125_v31 }
 0x391   :  { %4608 = vmatpush3.msra.mxu1 %v6101_v23 }
 0x392   :  { %4609 = vmatprep.subr.mxu1 %v4956_v0  ;;  %v2127_v17 = vand.u32 4294901760, %v2126_v15 }
 0x393   :  { %4610 = vmatpush3.msra.mxu1 %v6106_v19 }
 0x394   :  { %4611 = vmatprep.subr.mxu1 %v4956_v0  ;;  %4531 = vmatmul.mubr.f32.vlgmr.msra.gmra.mxu0 %v2127_v17 }
 0x395   :  { %4569 = vmatpush3.msra.mxu0 %v6082_v13  ;;  %4612 = vmatpush3.msra.mxu1 %v6114_v14  ;;  %v6831_v13 = vand.u32 4294901760, %v6236_v44 }
 0x396   :  { %4570 = vmatprep.subr.mxu0 %v4956_v0  ;;  %4613 = vmatprep.subr.mxu1 %v4956_v0 }
 0x397   :  { %4571 = vmatpush3.msra.mxu0 %v6085_v37  ;;  %4614 = vmatpush3.msra.mxu1 %v6125_v43  ;;  %v6832_v37 = vand.u32 4294901760, %v6239_v58 }
 0x398   :  { %4572 = vmatprep.subr.mxu0 %v4956_v0  ;;  %4615 = vmatprep.subr.mxu1 %v4956_v0 }
 0x399   :  { %4573 = vmatpush3.msra.mxu0 %v6104_v61  ;;  %4616 = vmatpush3.msra.mxu1 %v6137_v47 }
 0x39a   :  { %4574 = vmatprep.subr.mxu0 %v4956_v0  ;;  %4617 = vmatprep.subr.mxu1 %v4956_v0 }
 0x39b   :  { %4575 = vmatpush3.msra.mxu0 %v6112_v62  ;;  %4618 = vmatpush3.msra.mxu1 %v6144_v28 }
 0x39c   :  { %4576 = vmatprep.subr.mxu0 %v4956_v0  ;;  %4619 = vmatprep.subr.mxu1 %v4956_v0 }
 0x39d   :  { %4577 = vmatpush3.msra.mxu0 %v6123_v27  ;;  %4620 = vmatpush3.msra.mxu1 %v6157_v56 }
 0x39e   :  { %4578 = vmatprep.subr.mxu0 %v4956_v0  ;;  %4621 = vmatprep.subr.mxu1 %v4956_v0 }
 0x39f   :  { %4579 = vmatpush3.msra.mxu0 %v6134_v46  ;;  %4622 = vmatpush3.msra.mxu1 %v6167_v60  ;;  %v2698_v46 = vld [vmem:[#allocation2 + $0x268] sm:$0xff] }
 0x3a0   :  { %4580 = vmatprep.subr.mxu0 %v4956_v0  ;;  %4623 = vmatprep.subr.mxu1 %v4956_v0 }
 0x3a1   :  { %4581 = vmatpush3.msra.mxu0 %v6148_v48  ;;  %4624 = vmatpush3.msra.mxu1 %v6182_v36 }
 0x3a2   :  { %4582 = vmatprep.subr.mxu0 %v4956_v0  ;;  %4625 = vmatprep.subr.mxu1 %v4956_v0 }
 0x3a3   :  { %4583 = vmatpush3.msra.mxu0 %v6155_v57  ;;  %4626 = vmatpush3.msra.mxu1 %v6195_v21  ;;  %v2696_v57 = vld [vmem:[#allocation2 + $0x258] sm:$0xff] }
 0x3a4   :  { %4584 = vmatprep.subr.mxu0 %v4956_v0  ;;  %4627 = vmatprep.subr.mxu1 %v4956_v0 }
 0x3a5   :  { %4585 = vmatpush3.msra.mxu0 %v6165_v49  ;;  %4628 = vmatpush3.msra.mxu1 %v6203_v2  ;;  %v2695_v49 = vld [vmem:[#allocation2 + $0x250] sm:$0xff] }
 0x3a6   :  { %4586 = vmatprep.subr.mxu0 %v4956_v0  ;;  %4629 = vmatprep.subr.mxu1 %v4956_v0 }
 0x3a7   :  { %4587 = vmatpush3.msra.mxu0 %v6180_v3  ;;  %4630 = vmatpush3.msra.mxu1 %v6217_v33 }
 0x3a8   :  { %4588 = vmatprep.subr.mxu0 %v4956_v0  ;;  %4631 = vmatprep.subr.mxu1 %v4956_v0 }
 0x3a9   :  { %4589 = vmatpush3.msra.mxu0 %v6192_v20  ;;  %4632 = vmatpush3.msra.mxu1 %v6221_v12 }
 0x3aa   :  { %4590 = vmatprep.subr.mxu0 %v4956_v0  ;;  %4633 = vmatprep.subr.mxu1 %v4956_v0 }
 0x3ab   :  { %4591 = vmatpush3.msra.mxu0 %v6207_v7  ;;  %4634 = vmatpush3.msra.mxu1 %v6223_v32 }
 0x3ac   :  { %4592 = vmatprep.subr.mxu0 %v4956_v0  ;;  %4636 = vmatmul.mubr.f32.vlgmr.msra.gmra.mxu1 %v2125_v31  ;;  %v2689_v31 = vld [vmem:[#allocation2 + $0x220] sm:$0xff] }
 0x3ad   :  { %4673 = vmatprep.subr.mxu1 %v4956_v0  ;;  %4593 = vmatpush3.msra.mxu0 %v6215_v9 }
 0x3ae   :  { %4674 = vmatpush3.msra.mxu1 %v6077_v59  ;;  %4594 = vmatprep.subr.mxu0 %v4956_v0  ;;  %v6829_v59 = vand.u32 4294901760, %v6215_v9  ;;  %v2693_v9 = vld [vmem:[#allocation2 + $0x240] sm:$0xff] }
 0x3af   :  { %4675 = vmatprep.subr.mxu1 %v4956_v0  ;;  %4595 = vmatpush3.msra.mxu0 %v6229_v26 }
 0x3b0   :  { %4676 = vmatpush3.msra.mxu1 %v6079_v8  ;;  %4596 = vmatprep.subr.mxu0 %v4956_v0  ;;  %v6830_v8 = vand.u32 4294901760, %v6229_v26  ;;  %v2692_v26 = vld [vmem:[#allocation2 + $0x238] sm:$0xff] }
 0x3b1   :  { %4677 = vmatprep.subr.mxu1 %v4956_v0  ;;  %4597 = vmatpush3.msra.mxu0 %v6236_v44  ;;  %v6519_v50 = vand.u32 4294901760, %v2692_v26 }
 0x3b2   :  { %4678 = vmatpush3.msra.mxu1 %v6101_v23  ;;  %4598 = vmatprep.subr.mxu0 %v4956_v0 }
 0x3b3   :  { %4679 = vmatprep.subr.mxu1 %v4956_v0  ;;  %4599 = vmatpush3.msra.mxu0 %v6239_v58  ;;  %v6527_v51 = vsub.f32 %v2692_v26, %v6519_v50 }
 0x3b4   :  { %4600 = vmatprep.mubr.msk.f32.mxu0 %vm4957_vm0, %v4956_v0  ;;  %4680 = vmatpush3.msra.mxu1 %v6106_v19 }
 0x3b5   :  { %4601 = vmatmul.mubr.f32.vlgmr.msra.gmra.mxu0 %v6276_v42  ;;  %4638 = vmatprep.subr.mxu0 %v4956_v0  ;;  %v2856_v6 = vand.u32 4294901760, %v6527_v51 }
 0x3b6   :  { %4681 = vmatprep.subr.mxu1 %v4956_v0  ;;  %4639 = vmatpush3.msra.mxu0 %v2136_v38  ;;  %v2700_v38 = vld [vmem:[#allocation2 + $0x278] sm:$0xff] }
 0x3b7   :  { %4682 = vmatpush3.msra.mxu1 %v6114_v14  ;;  %4640 = vmatprep.subr.mxu0 %v4956_v0  ;;  %v6439_v23 = vand.u32 4294901760, %v2700_v38  ;;  %v2857_v17 = vsub.f32 %v6527_v51, %v2856_v6 }
 0x3b8   :  { %4683 = vmatprep.subr.mxu1 %v4956_v0  ;;  %4641 = vmatpush3.msra.mxu0 %v2143_v52  ;;  %v2699_v52 = vld [vmem:[#allocation2 + $0x270] sm:$0xff] }
 0x3b9   :  { %4684 = vmatpush3.msra.mxu1 %v6125_v43  ;;  %4642 = vmatprep.subr.mxu0 %v4956_v0  ;;  %v6441_v61 = vand.u32 4294901760, %v2699_v52  ;;  %v6444_v19 = vsub.f32 %v2700_v38, %v6439_v23  ;;  %v2858_v38 = vand.u32 4294901760, %v2857_v17 }
 0x3ba   :  { %4685 = vmatprep.subr.mxu1 %v4956_v0  ;;  %4643 = vmatpush3.msra.mxu0 %v2150_v34 }
 0x3bb   :  { %4686 = vmatpush3.msra.mxu1 %v6137_v47  ;;  %4644 = vmatprep.subr.mxu0 %v4956_v0  ;;  %v6447_v34 = vsub.f32 %v2699_v52, %v6441_v61  ;;  %v2800_v62 = vand.u32 4294901760, %v6444_v19  ;;  %v6463_v47 = vand.u32 4294901760, %v2698_v46 }
 0x3bc   :  { %4687 = vmatprep.subr.mxu1 %v4956_v0  ;;  %4645 = vmatpush3.msra.mxu0 %v2157_v24 }
 0x3bd   :  { %4688 = vmatpush3.msra.mxu1 %v6144_v28  ;;  %4646 = vmatprep.subr.mxu0 %v4956_v0  ;;  %v2807_v14 = vand.u32 4294901760, %v6447_v34  ;;  %v2801_v24 = vsub.f32 %v6444_v19, %v2800_v62  ;;  %v6466_v28 = vsub.f32 %v2698_v46, %v6463_v47 }
 0x3be   :  { %4689 = vmatprep.subr.mxu1 %v4956_v0  ;;  %4647 = vmatpush3.msra.mxu0 %v2164_v45 }
 0x3bf   :  { %4690 = vmatpush3.msra.mxu1 %v6157_v56  ;;  %4648 = vmatprep.subr.mxu0 %v4956_v0  ;;  %v2808_v27 = vsub.f32 %v6447_v34, %v2807_v14  ;;  %v2802_v43 = vand.u32 4294901760, %v2801_v24  ;;  %v2814_v56 = vand.u32 4294901760, %v6466_v28 }
 0x3c0   :  { %4691 = vmatprep.subr.mxu1 %v4956_v0  ;;  %4649 = vmatpush3.msra.mxu0 %v2171_v41  ;;  %v2697_v41 = vld [vmem:[#allocation2 + $0x260] sm:$0xff] }
 0x3c1   :  { %4692 = vmatpush3.msra.mxu1 %v6167_v60  ;;  %4650 = vmatprep.subr.mxu0 %v4956_v0  ;;  %v2809_v45 = vand.u32 4294901760, %v2808_v27  ;;  %v6468_v48 = vand.u32 4294901760, %v2697_v41  ;;  %v2815_v60 = vsub.f32 %v6466_v28, %v2814_v56 }
 0x3c2   :  { %4693 = vmatprep.subr.mxu1 %v4956_v0  ;;  %4651 = vmatpush3.msra.mxu0 %v2178_v29 }
 0x3c3   :  { %4694 = vmatpush3.msra.mxu1 %v6182_v36  ;;  %4652 = vmatprep.subr.mxu0 %v4956_v0  ;;  %v6474_v29 = vsub.f32 %v2697_v41, %v6468_v48  ;;  %v6487_v36 = vand.u32 4294901760, %v2695_v49  ;;  %v2816_v20 = vand.u32 4294901760, %v2815_v60  ;;  %v2686_v60 = vld [vmem:[#allocation2 + $0x208] sm:$0xff] }
 0x3c4   :  { %4695 = vmatprep.subr.mxu1 %v4956_v0  ;;  %4653 = vmatpush3.msra.mxu0 %v2185_v25  ;;  %v6476_v25 = vand.u32 4294901760, %v2696_v57 }
 0x3c5   :  { %4696 = vmatpush3.msra.mxu1 %v6195_v21  ;;  %4654 = vmatprep.subr.mxu0 %v4956_v0 }
 0x3c6   :  { %4697 = vmatprep.subr.mxu1 %v4956_v0  ;;  %4655 = vmatpush3.msra.mxu0 %v2192_v55  ;;  %v2821_v55 = vand.u32 4294901760, %v6474_v29  ;;  %v6485_v3 = vsub.f32 %v2696_v57, %v6476_v25 }
 0x3c7   :  { %4698 = vmatpush3.msra.mxu1 %v6203_v2  ;;  %4656 = vmatprep.subr.mxu0 %v4956_v0  ;;  %v6496_v2 = vsub.f32 %v2695_v49, %v6487_v36 }
 0x3c8   :  { %4699 = vmatprep.subr.mxu1 %v4956_v0  ;;  %4657 = vmatpush3.msra.mxu0 %v2199_v18  ;;  %v2694_v18 = vld [vmem:[#allocation2 + $0x248] sm:$0xff]  ;;  %v2822_v21 = vsub.f32 %v6474_v29, %v2821_v55 }
 0x3c9   :  { %4700 = vmatpush3.msra.mxu1 %v6217_v33  ;;  %4658 = vmatprep.subr.mxu0 %v4956_v0  ;;  %v6499_v7 = vand.u32 4294901760, %v2694_v18 }
 0x3ca   :  { %4701 = vmatprep.subr.mxu1 %v4956_v0  ;;  %4659 = vmatpush3.msra.mxu0 %v2206_v1  ;;  %v2828_v1 = vand.u32 4294901760, %v6485_v3  ;;  %v2823_v33 = vand.u32 4294901760, %v2822_v21  ;;  %v6583_v21 = vand.u32 4294901760, %v2686_v60 }
 0x3cb   :  { %4702 = vmatpush3.msra.mxu1 %v6221_v12  ;;  %4660 = vmatprep.subr.mxu0 %v4956_v0  ;;  %v2835_v12 = vand.u32 4294901760, %v6496_v2 }
 0x3cc   :  { %4703 = vmatprep.subr.mxu1 %v4956_v0  ;;  %4661 = vmatpush3.msra.mxu0 %v2213_v11  ;;  %v2829_v11 = vsub.f32 %v6485_v3, %v2828_v1 }
 0x3cd   :  { %4704 = vmatpush3.msra.mxu1 %v6223_v32  ;;  %4705 = vmatprep.mubr.msk.f32.mxu1 %vm4957_vm0, %v4956_v0  ;;  %v6506_v32 = vand.u32 4294901760, %v2693_v9  ;;  %v2836_v58 = vsub.f32 %v6496_v2, %v2835_v12 }
 0x3ce   :  { %4662 = vmatprep.subr.mxu0 %v4956_v0  ;;  %4706 = vmatmul.mubr.f32.vlgmr.msra.gmra.mxu1 %v6272_v39  ;;  %v2830_v44 = vand.u32 4294901760, %v2829_v11 }
 0x3cf   :  { %4663 = vmatpush3.msra.mxu0 %v6829_v59  ;;  %4670 = vmatprep.mubr.msk.f32.mxu0 %vm4957_vm0, %v4956_v0  ;;  %v6517_v22 = vsub.f32 %v2693_v9, %v6506_v32  ;;  %v2837_v16 = vand.u32 4294901760, %v2836_v58  ;;  %v2863_v59 = vand.u32 4294901760, %v6542_v53  ;;  %v6598_v58 = vsub.f32 %v2686_v60, %v6583_v21 }
 0x3d0   :  { %4664 = vmatprep.subr.mxu0 %v4956_v0  ;;  %4743 = vmatprep.subr.mxu1 %v4956_v0 }
 0x3d1   :  { %4665 = vmatpush3.msra.mxu0 %v6830_v8  ;;  %4775 = vmatprep.mubr.msk.f32.mxu1 %vm4957_vm0, %v4956_v0  ;;  %v2849_v63 = vand.u32 4294901760, %v6517_v22  ;;  %v6554_v8 = vsub.f32 %v2690_v35, %v6544_v10  ;;  %v2864_v52 = vsub.f32 %v6542_v53, %v2863_v59 }
 0x3d2   :  { %4666 = vmatprep.subr.mxu0 %v4956_v0  ;;  %4744 = vmatpush3.msra.mxu1 %v2802_v43 }
 0x3d3   :  { %4667 = vmatpush3.msra.mxu0 %v6831_v13  ;;  %4745 = vmatprep.subr.mxu1 %v4956_v0  ;;  %v2850_v40 = vsub.f32 %v6517_v22, %v2849_v63  ;;  %v6557_v13 = vand.u32 4294901760, %v2689_v31  ;;  %v2870_v24 = vand.u32 4294901760, %v6554_v8  ;;  %v2865_v46 = vand.u32 4294901760, %v2864_v52 }
 0x3d4   :  { %4668 = vmatprep.subr.mxu0 %v4956_v0  ;;  %4746 = vmatpush3.msra.mxu1 %v2809_v45  ;;  %v2687_v45 = vld [vmem:[#allocation2 + $0x210] sm:$0xff] }
 0x3d5   :  { %4669 = vmatpush3.msra.mxu0 %v6832_v37  ;;  %4747 = vmatprep.subr.mxu1 %v4956_v0  ;;  %v2851_v15 = vand.u32 4294901760, %v2850_v40  ;;  %v2688_v37 = vld [vmem:[#allocation2 + $0x218] sm:$0xff]  ;;  %v6569_v43 = vsub.f32 %v2689_v31, %v6557_v13  ;;  %v2871_v41 = vsub.f32 %v6554_v8, %v2870_v24  ;;  %v6579_v49 = vand.u32 4294901760, %v2687_v45 }
 0x3d6   :  { %4671 = vmatmul.mubr.f32.vlgmr.msra.gmra.mxu0 %v6272_v39  ;;  %4708 = vmatprep.subr.mxu0 %v4956_v0  ;;  %v6510_v39 = vsub.f32 %v2694_v18, %v6499_v7  ;;  %v6565_v27 = vand.u32 4294901760, %v2688_v37  ;;  %v2685_v18 = vld [vmem:[#allocation2 + $0x200] sm:$0xff]  ;;  %v6818_v40 = vand.u32 4294901760, %v6598_v58 }
 0x3d7   :  { %4740 = vmatprep.mubr.msk.f32.mxu0 %vm4957_vm0, %v4956_v0  ;;  %4709 = vmatpush3.msra.mxu0 %v6439_v23  ;;  %v6585_v9 = vand.u32 4294901760, %v2685_v18  ;;  %v6591_v26 = vsub.f32 %v2687_v45, %v6579_v49 }
 0x3d8   :  { %4710 = vmatprep.subr.mxu0 %v4956_v0  ;;  %4748 = vmatpush3.msra.mxu1 %v2816_v20  ;;  %v2842_v54 = vand.u32 4294901760, %v6510_v39  ;;  %v6577_v57 = vsub.f32 %v2688_v37, %v6565_v27  ;;  %v2877_v20 = vand.u32 4294901760, %v6569_v43  ;;  %v2899_v17 = vsub.f32 %v6598_v58, %v6818_v40 }
 0x3d9   :  { %4711 = vmatpush3.msra.mxu0 %v6441_v61  ;;  %4749 = vmatprep.subr.mxu1 %v4956_v0  ;;  %v6601_v4 = vsub.f32 %v2685_v18, %v6585_v9 }
 0x3da   :  { %4712 = vmatprep.subr.mxu0 %v4956_v0  ;;  %4750 = vmatpush3.msra.mxu1 %v2823_v33  ;;  %v2843_v30 = vsub.f32 %v6510_v39, %v2842_v54  ;;  %v2872_v33 = vand.u32 4294901760, %v2871_v41  ;;  %v6820_v11 = vand.u32 4294901760, %v6577_v57  ;;  %v2900_v52 = vand.u32 4294901760, %v2899_v17 }
 0x3db   :  { %4713 = vmatpush3.msra.mxu0 %v6463_v47  ;;  %4751 = vmatprep.subr.mxu1 %v4956_v0 }
 0x3dc   :  { %4714 = vmatprep.subr.mxu0 %v4956_v0  ;;  %4752 = vmatpush3.msra.mxu1 %v2830_v44  ;;  %v2844_v42 = vand.u32 4294901760, %v2843_v30  ;;  %v2878_v44 = vsub.f32 %v6569_v43, %v2877_v20  ;;  %v6819_v30 = vand.u32 4294901760, %v6591_v26 }
 0x3dd   :  { %4715 = vmatpush3.msra.mxu0 %v6468_v48  ;;  %4753 = vmatprep.subr.mxu1 %v4956_v0 }
 0x3de   :  { %4716 = vmatprep.subr.mxu0 %v4956_v0  ;;  %4754 = vmatpush3.msra.mxu1 %v2837_v16  ;;  %v2885_v16 = vsub.f32 %v6577_v57, %v6820_v11  ;;  %v2879_v35 = vand.u32 4294901760, %v2878_v44 }
 0x3df   :  { %4717 = vmatpush3.msra.mxu0 %v6476_v25  ;;  %4755 = vmatprep.subr.mxu1 %v4956_v0 }
 0x3e0   :  { %4718 = vmatprep.subr.mxu0 %v4956_v0  ;;  %4756 = vmatpush3.msra.mxu1 %v2844_v42  ;;  %v6817_v42 = vand.u32 4294901760, %v6601_v4  ;;  %v2886_v31 = vand.u32 4294901760, %v2885_v16 }
 0x3e1   :  { %4719 = vmatpush3.msra.mxu0 %v6487_v36  ;;  %4757 = vmatprep.subr.mxu1 %v4956_v0 }
 0x3e2   :  { %4720 = vmatprep.subr.mxu0 %v4956_v0  ;;  %4758 = vmatpush3.msra.mxu1 %v2851_v15  ;;  %v2892_v15 = vsub.f32 %v6591_v26, %v6819_v30  ;;  %v2906_v37 = vsub.f32 %v6601_v4, %v6817_v42 }
 0x3e3   :  { %4721 = vmatpush3.msra.mxu0 %v6499_v7  ;;  %4759 = vmatprep.subr.mxu1 %v4956_v0 }
 0x3e4   :  { %4722 = vmatprep.subr.mxu0 %v4956_v0  ;;  %4760 = vmatpush3.msra.mxu1 %v2858_v38  ;;  %v2893_v38 = vand.u32 4294901760, %v2892_v15  ;;  %v2907_v45 = vand.u32 4294901760, %v2906_v37 }
 0x3e5   :  { %4723 = vmatpush3.msra.mxu0 %v6506_v32  ;;  %4761 = vmatprep.subr.mxu1 %v4956_v0 }
 0x3e6   :  { %4724 = vmatprep.subr.mxu0 %v4956_v0  ;;  %4762 = vmatpush3.msra.mxu1 %v2865_v46 }
 0x3e7   :  { %4725 = vmatpush3.msra.mxu0 %v6519_v50  ;;  %4763 = vmatprep.subr.mxu1 %v4956_v0 }
 0x3e8   :  { %4726 = vmatprep.subr.mxu0 %v4956_v0  ;;  %4764 = vmatpush3.msra.mxu1 %v2872_v33 }
 0x3e9   :  { %4727 = vmatpush3.msra.mxu0 %v6529_v5  ;;  %4765 = vmatprep.subr.mxu1 %v4956_v0 }
 0x3ea   :  { %4728 = vmatprep.subr.mxu0 %v4956_v0  ;;  %4766 = vmatpush3.msra.mxu1 %v2879_v35 }
 0x3eb   :  { %4729 = vmatpush3.msra.mxu0 %v6544_v10  ;;  %4767 = vmatprep.subr.mxu1 %v4956_v0 }
 0x3ec   :  { %4730 = vmatprep.subr.mxu0 %v4956_v0  ;;  %4768 = vmatpush3.msra.mxu1 %v2886_v31  ;;  %v3356_v31 = vld [vmem:[%s6803_s2 + $0x3] ss:$0 sm:$0xff] }
 0x3ed   :  { %4731 = vmatpush3.msra.mxu0 %v6557_v13  ;;  %4769 = vmatprep.subr.mxu1 %v4956_v0 }
 0x3ee   :  { %4732 = vmatprep.subr.mxu0 %v4956_v0  ;;  %4770 = vmatpush3.msra.mxu1 %v2893_v38 }
 0x3ef   :  { %4733 = vmatpush3.msra.mxu0 %v6565_v27  ;;  %4771 = vmatprep.subr.mxu1 %v4956_v0 }
 0x3f0   :  { %4734 = vmatprep.subr.mxu0 %v4956_v0  ;;  %4772 = vmatpush3.msra.mxu1 %v2900_v52 }
 0x3f1   :  { %4735 = vmatpush3.msra.mxu0 %v6579_v49  ;;  %4773 = vmatprep.subr.mxu1 %v4956_v0 }
 0x3f2   :  { %4736 = vmatprep.subr.mxu0 %v4956_v0  ;;  %4774 = vmatpush3.msra.mxu1 %v2907_v45 }
 0x3f3   :  { %4737 = vmatpush3.msra.mxu0 %v6583_v21  ;;  %4813 = vmatprep.subr.mxu1 %v4956_v0 }
 0x3f4   :  { %4738 = vmatprep.subr.mxu0 %v4956_v0 }
 0x3f5   :  { %4739 = vmatpush3.msra.mxu0 %v6585_v9 }
 0x3f6   :  { %4778 = vmatprep.subr.mxu0 %v4956_v0 }
 0x44c   :  { %v2280_v46 = vpop.f32.mrf.mxu1 }
 0x44e   :  { %v4567_v41 = vpop.f32.mrf.mxu1 }
 0x454   :  { %v2129_v60 = vpop.f32.mrf.mxu0 }
 0x455   :  { %v2130_v15 = vadd.f32 %v3356_v31, %v2129_v60 }
 0x456   :  { %v4532_v18 = vpop.f32.mrf.mxu0 }
 0x457   :  { %v2281_v37 = vadd.f32 %v2280_v46, %v2130_v15 }
 0x46c   :  { %v2473_v33 = vpop.f32.mrf.mxu1 }
 0x46e   :  { %v4637_v44 = vpop.f32.mrf.mxu1 }
 0x475   :  { %v2384_v16 = vpop.f32.mrf.mxu0 }
 0x476   :  { %v2385_v52 = vadd.f32 %v2384_v16, %v2281_v37 }
 0x477   :  { %v4602_v35 = vpop.f32.mrf.mxu0 }
 0x478   :  { %v2474_v45 = vadd.f32 %v2473_v33, %v2385_v52 }
 0x48e   :  { %v2679_v17 = vpop.f32.mrf.mxu1 }
 0x490   :  { %v4707_v38 = vpop.f32.mrf.mxu1 }
 0x496   :  { %v2592_v42 = vpop.f32.mrf.mxu0 }
 0x497   :  { %v2593_v40 = vadd.f32 %v2592_v42, %v2474_v45 }
 0x498   :  { %v4672_v30 = vpop.f32.mrf.mxu0 }
 0x499   :  { %v2680_v41 = vadd.f32 %v2679_v17, %v2593_v40 }
 0x49b   :  { %4929 = vtanh.f32 %v2680_v41 }
 0x4a8   :  { %v4930_v18 = vpop.eup %4929 }
 0x4a9   :  { %v6634_v11 = vand.u32 4294901760, %v4930_v18 }
 0x4ab   :  { %4776 = vmatmul.mubr.f32.vlgmr.msra.gmra.mxu1 %v6634_v11  ;;  %v6638_v44 = vsub.f32 %v4930_v18, %v6634_v11 }
 0x4ac   :  { %4814 = vmatpush3.msra.mxu1 %v6439_v23  ;;  %4845 = vmatprep.mubr.msk.f32.mxu1 %vm4957_vm0, %v4956_v0 }
 0x4ad   :  { %4815 = vmatprep.subr.mxu1 %v4956_v0  ;;  %v2789_v42 = vand.u32 4294901760, %v6638_v44 }
 0x4ae   :  { %4816 = vmatpush3.msra.mxu1 %v6441_v61 }
 0x4af   :  { %4817 = vmatprep.subr.mxu1 %v4956_v0  ;;  %v2790_v30 = vsub.f32 %v6638_v44, %v2789_v42 }
 0x4b0   :  { %4818 = vmatpush3.msra.mxu1 %v6463_v47 }
 0x4b1   :  { %4819 = vmatprep.subr.mxu1 %v4956_v0  ;;  %v2791_v40 = vand.u32 4294901760, %v2790_v30 }
 0x4b2   :  { %4820 = vmatpush3.msra.mxu1 %v6468_v48 }
 0x4b3   :  { %4821 = vmatprep.subr.mxu1 %v4956_v0  ;;  %4741 = vmatmul.mubr.f32.vlgmr.msra.gmra.mxu0 %v2791_v40 }
 0x4b4   :  { %4779 = vmatpush3.msra.mxu0 %v6444_v19  ;;  %4822 = vmatpush3.msra.mxu1 %v6476_v25  ;;  %v6835_v19 = vand.u32 4294901760, %v6598_v58 }
 0x4b5   :  { %4780 = vmatprep.subr.mxu0 %v4956_v0  ;;  %4823 = vmatprep.subr.mxu1 %v4956_v0 }
 0x4b6   :  { %4781 = vmatpush3.msra.mxu0 %v6447_v34  ;;  %4824 = vmatpush3.msra.mxu1 %v6487_v36  ;;  %v6836_v34 = vand.u32 4294901760, %v6601_v4 }
 0x4b7   :  { %4782 = vmatprep.subr.mxu0 %v4956_v0  ;;  %4825 = vmatprep.subr.mxu1 %v4956_v0 }
 0x4b8   :  { %4783 = vmatpush3.msra.mxu0 %v6466_v28  ;;  %4826 = vmatpush3.msra.mxu1 %v6499_v7 }
 0x4b9   :  { %4784 = vmatprep.subr.mxu0 %v4956_v0  ;;  %4827 = vmatprep.subr.mxu1 %v4956_v0 }
 0x4ba   :  { %4785 = vmatpush3.msra.mxu0 %v6474_v29  ;;  %4828 = vmatpush3.msra.mxu1 %v6506_v32 }
 0x4bb   :  { %4786 = vmatprep.subr.mxu0 %v4956_v0  ;;  %4829 = vmatprep.subr.mxu1 %v4956_v0 }
 0x4bc   :  { %4787 = vmatpush3.msra.mxu0 %v6485_v3  ;;  %4830 = vmatpush3.msra.mxu1 %v6519_v50 }
 0x4bd   :  { %4788 = vmatprep.subr.mxu0 %v4956_v0  ;;  %4831 = vmatprep.subr.mxu1 %v4956_v0 }
 0x4be   :  { %4789 = vmatpush3.msra.mxu0 %v6496_v2  ;;  %4832 = vmatpush3.msra.mxu1 %v6529_v5 }
 0x4bf   :  { %4790 = vmatprep.subr.mxu0 %v4956_v0  ;;  %4833 = vmatprep.subr.mxu1 %v4956_v0 }
 0x4c0   :  { %4791 = vmatpush3.msra.mxu0 %v6510_v39  ;;  %4834 = vmatpush3.msra.mxu1 %v6544_v10 }
 0x4c1   :  { %4792 = vmatprep.subr.mxu0 %v4956_v0  ;;  %4835 = vmatprep.subr.mxu1 %v4956_v0 }
 0x4c2   :  { %4793 = vmatpush3.msra.mxu0 %v6517_v22  ;;  %4836 = vmatpush3.msra.mxu1 %v6557_v13 }
 0x4c3   :  { %4794 = vmatprep.subr.mxu0 %v4956_v0  ;;  %4837 = vmatprep.subr.mxu1 %v4956_v0 }
 0x4c4   :  { %4795 = vmatpush3.msra.mxu0 %v6527_v51  ;;  %4838 = vmatpush3.msra.mxu1 %v6565_v27 }
 0x4c5   :  { %4796 = vmatprep.subr.mxu0 %v4956_v0  ;;  %4839 = vmatprep.subr.mxu1 %v4956_v0 }
 0x4c6   :  { %4797 = vmatpush3.msra.mxu0 %v6542_v53  ;;  %4840 = vmatpush3.msra.mxu1 %v6579_v49 }
 0x4c7   :  { %4798 = vmatprep.subr.mxu0 %v4956_v0  ;;  %4841 = vmatprep.subr.mxu1 %v4956_v0 }
 0x4c8   :  { %4799 = vmatpush3.msra.mxu0 %v6554_v8  ;;  %4842 = vmatpush3.msra.mxu1 %v6583_v21 }
 0x4c9   :  { %4800 = vmatprep.subr.mxu0 %v4956_v0  ;;  %4843 = vmatprep.subr.mxu1 %v4956_v0 }
 0x4ca   :  { %4801 = vmatpush3.msra.mxu0 %v6569_v43  ;;  %4844 = vmatpush3.msra.mxu1 %v6585_v9 }
 0x4cb   :  { %4802 = vmatprep.subr.mxu0 %v4956_v0  ;;  %4846 = vmatmul.mubr.f32.vlgmr.msra.gmra.mxu1 %v2789_v42 }
 0x4cc   :  { %4883 = vmatprep.subr.mxu1 %v4956_v0  ;;  %4803 = vmatpush3.msra.mxu0 %v6577_v57 }
 0x4cd   :  { %4884 = vmatpush3.msra.mxu1 %v6439_v23  ;;  %4804 = vmatprep.subr.mxu0 %v4956_v0  ;;  %v6833_v23 = vand.u32 4294901760, %v6577_v57 }
 0x4ce   :  { %4885 = vmatprep.subr.mxu1 %v4956_v0  ;;  %4805 = vmatpush3.msra.mxu0 %v6591_v26 }
 0x4cf   :  { %4886 = vmatpush3.msra.mxu1 %v6441_v61  ;;  %4806 = vmatprep.subr.mxu0 %v4956_v0  ;;  %v6834_v61 = vand.u32 4294901760, %v6591_v26 }
 0x4d0   :  { %4887 = vmatprep.subr.mxu1 %v4956_v0  ;;  %4807 = vmatpush3.msra.mxu0 %v6598_v58 }
 0x4d1   :  { %4888 = vmatpush3.msra.mxu1 %v6463_v47  ;;  %4808 = vmatprep.subr.mxu0 %v4956_v0 }
 0x4d2   :  { %4889 = vmatprep.subr.mxu1 %v4956_v0  ;;  %4809 = vmatpush3.msra.mxu0 %v6601_v4 }
 0x4d3   :  { %4810 = vmatprep.mubr.msk.f32.mxu0 %vm4957_vm0, %v4956_v0  ;;  %4890 = vmatpush3.msra.mxu1 %v6468_v48 }
 0x4d4   :  { %4811 = vmatmul.mubr.f32.vlgmr.msra.gmra.mxu0 %v6638_v44  ;;  %4848 = vmatprep.subr.mxu0 %v4956_v0 }
 0x4d5   :  { %4891 = vmatprep.subr.mxu1 %v4956_v0  ;;  %4849 = vmatpush3.msra.mxu0 %v2800_v62 }
 0x4d6   :  { %4892 = vmatpush3.msra.mxu1 %v6476_v25  ;;  %4850 = vmatprep.subr.mxu0 %v4956_v0 }
 0x4d7   :  { %4893 = vmatprep.subr.mxu1 %v4956_v0  ;;  %4851 = vmatpush3.msra.mxu0 %v2807_v14 }
 0x4d8   :  { %4894 = vmatpush3.msra.mxu1 %v6487_v36  ;;  %4852 = vmatprep.subr.mxu0 %v4956_v0 }
 0x4d9   :  { %4895 = vmatprep.subr.mxu1 %v4956_v0  ;;  %4853 = vmatpush3.msra.mxu0 %v2814_v56 }
 0x4da   :  { %4896 = vmatpush3.msra.mxu1 %v6499_v7  ;;  %4854 = vmatprep.subr.mxu0 %v4956_v0 }
 0x4db   :  { %4897 = vmatprep.subr.mxu1 %v4956_v0  ;;  %4855 = vmatpush3.msra.mxu0 %v2821_v55  ;;  %v3357_v55 = vld [vmem:[%s6803_s2 + $0x4] ss:$0 sm:$0xff] }
 0x4dc   :  { %4898 = vmatpush3.msra.mxu1 %v6506_v32  ;;  %4856 = vmatprep.subr.mxu0 %v4956_v0 }
 0x4dd   :  { %4899 = vmatprep.subr.mxu1 %v4956_v0  ;;  %4857 = vmatpush3.msra.mxu0 %v2828_v1 }
 0x4de   :  { %4900 = vmatpush3.msra.mxu1 %v6519_v50  ;;  %4858 = vmatprep.subr.mxu0 %v4956_v0 }
 0x4df   :  { %4901 = vmatprep.subr.mxu1 %v4956_v0  ;;  %4859 = vmatpush3.msra.mxu0 %v2835_v12 }
 0x4e0   :  { %4902 = vmatpush3.msra.mxu1 %v6529_v5  ;;  %4860 = vmatprep.subr.mxu0 %v4956_v0 }
 0x4e1   :  { %4903 = vmatprep.subr.mxu1 %v4956_v0  ;;  %4861 = vmatpush3.msra.mxu0 %v2842_v54 }
 0x4e2   :  { %4904 = vmatpush3.msra.mxu1 %v6544_v10  ;;  %4862 = vmatprep.subr.mxu0 %v4956_v0 }
 0x4e3   :  { %4905 = vmatprep.subr.mxu1 %v4956_v0  ;;  %4863 = vmatpush3.msra.mxu0 %v2849_v63 }
 0x4e4   :  { %4906 = vmatpush3.msra.mxu1 %v6557_v13  ;;  %4864 = vmatprep.subr.mxu0 %v4956_v0 }
 0x4e5   :  { %4907 = vmatprep.subr.mxu1 %v4956_v0  ;;  %4865 = vmatpush3.msra.mxu0 %v2856_v6 }
 0x4e6   :  { %4908 = vmatpush3.msra.mxu1 %v6565_v27  ;;  %4866 = vmatprep.subr.mxu0 %v4956_v0 }
 0x4e7   :  { %4909 = vmatprep.subr.mxu1 %v4956_v0  ;;  %4867 = vmatpush3.msra.mxu0 %v2863_v59 }
 0x4e8   :  { %4910 = vmatpush3.msra.mxu1 %v6579_v49  ;;  %4868 = vmatprep.subr.mxu0 %v4956_v0 }
 0x4e9   :  { %4911 = vmatprep.subr.mxu1 %v4956_v0  ;;  %4869 = vmatpush3.msra.mxu0 %v2870_v24 }
 0x4ea   :  { %4912 = vmatpush3.msra.mxu1 %v6583_v21  ;;  %4870 = vmatprep.subr.mxu0 %v4956_v0 }
 0x4eb   :  { %4913 = vmatprep.subr.mxu1 %v4956_v0  ;;  %4871 = vmatpush3.msra.mxu0 %v2877_v20 }
 0x4ec   :  { %4914 = vmatpush3.msra.mxu1 %v6585_v9  ;;  %4915 = vmatprep.mubr.msk.f32.mxu1 %vm4957_vm0, %v4956_v0 }
 0x4ed   :  { %4872 = vmatprep.subr.mxu0 %v4956_v0  ;;  %4916 = vmatmul.mubr.f32.vlgmr.msra.gmra.mxu1 %v6634_v11 }
 0x4ee   :  { %4873 = vmatpush3.msra.mxu0 %v6833_v23  ;;  %4880 = vmatprep.mubr.msk.f32.mxu0 %vm4957_vm0, %v4956_v0 }
 0x4ef   :  { %4874 = vmatprep.subr.mxu0 %v4956_v0 }
 0x4f0   :  { %4875 = vmatpush3.msra.mxu0 %v6834_v61 }
 0x4f1   :  { %4876 = vmatprep.subr.mxu0 %v4956_v0 }
 0x4f2   :  { %4877 = vmatpush3.msra.mxu0 %v6835_v19 }
 0x4f3   :  { %4878 = vmatprep.subr.mxu0 %v4956_v0 }
 0x4f4   :  { %4879 = vmatpush3.msra.mxu0 %v6836_v34 }
 0x4f5   :  { %4881 = vmatmul.mubr.f32.vlgmr.msra.gmra.mxu0 %v6634_v11 }
 0x56b   :  { %v2944_v62 = vpop.f32.mrf.mxu1 }
 0x56d   :  { %v4777_v14 = vpop.f32.mrf.mxu1 }
 0x573   :  { %v2793_v47 = vpop.f32.mrf.mxu0 }
 0x574   :  { %v2794_v3 = vadd.f32 %v3357_v55, %v2793_v47 }
 0x575   :  { %v4742_v28 = vpop.f32.mrf.mxu0 }
 0x576   :  { %v2945_v0 = vadd.f32 %v2944_v62, %v2794_v3 }
 0x58b   :  { %v3137_v48 = vpop.f32.mrf.mxu1 }
 0x58d   :  { %v4847_v56 = vpop.f32.mrf.mxu1 }
 0x594   :  { %v3048_v29 = vpop.f32.mrf.mxu0 }
 0x595   :  { %v3049_v2 = vadd.f32 %v3048_v29, %v2945_v0 }
 0x596   :  { %v4812_v25 = vpop.f32.mrf.mxu0 }
 0x597   :  { %v3138_v7 = vadd.f32 %v3137_v48, %v3049_v2 }
 0x5ad   :  { %v3343_v36 = vpop.f32.mrf.mxu1 }
 0x5af   :  { %v4917_v1 = vpop.f32.mrf.mxu1 }
 0x5b5   :  { %v3256_v12 = vpop.f32.mrf.mxu0 }
 0x5b6   :  { %v3257_v32 = vadd.f32 %v3256_v12, %v3138_v7 }
 0x5b7   :  { %v4882_v39 = vpop.f32.mrf.mxu0 }
 0x5b8   :  { %v3344_v22 = vadd.f32 %v3343_v36, %v3257_v32 }
 0x5ba   :  { %3347 = vst [vmem:[%s6804_s3] sm:$0xff] %v3344_v22 }
 0x5bb   :  { %3352 = vsyncpa [#allocation3], 1 }

</bundles_post_ra>
